<compile_context>
chip_gen: v7x
topology: tpu7x:2x2x1
jax: 0.10.0
libtpu: 0.0.40
codegen_flags: <defaults>
</compile_context>

<pallas_src>
import math
import jax
import jax.numpy as jnp
from jax.experimental import pallas as pl
from jax.experimental.pallas import tpu as pltpu

NUM_LAYERS = 3
LAYER_SIZES = [256, 128, 64, 32]   # layer_size_list_struct
LATENT = LAYER_SIZES[-1]           # 32 = decoder input width
LANE = 128                         # lane width; hidden dims are padded to this


def _round_up(x, m):
    return (x + m - 1) // m * m


# ---------------------------------------------------------------------------
# Kernel: one batch tile of the Decoder forward.
#   y = exp( tanh( tanh(x @ W0 + b0) @ W1 + b1 ) @ W2 + b2 )
# All matmuls accumulate in f32 on the MXU; activations stay f32 (v5e has no
# bf16 VPU/EUP path and the final exp is range-sensitive).
# ---------------------------------------------------------------------------
def decoder_kernel(x_ref, w0_ref, b0_ref, w1_ref, b1_ref, w2_ref, b2_ref, y_ref):
    f32 = jnp.float32
    x = x_ref[...]                                                   # (TB, 32) f32
    h = jnp.tanh(jnp.dot(x, w0_ref[...], preferred_element_type=f32) + b0_ref[...])
    h = jnp.tanh(jnp.dot(h, w1_ref[...], preferred_element_type=f32) + b1_ref[...])
    y = jnp.exp(jnp.dot(h, w2_ref[...], preferred_element_type=f32) + b2_ref[...])
    y_ref[...] = y.astype(y_ref.dtype)


# ---------------------------------------------------------------------------
# Parameter init (PyTorch nn.Linear default init; weight stored as (in, out)
# so y = x @ W + b matches torch's x @ W.T + b) and one-time preparation.
# ---------------------------------------------------------------------------
def _init_linear(key, fan_in, fan_out):
    kw, kb = jax.random.split(key)
    bound = 1.0 / math.sqrt(fan_in)
    w = jax.random.uniform(kw, (fan_in, fan_out), jnp.float32, -bound, bound)
    b = jax.random.uniform(kb, (1, fan_out), jnp.float32, -bound, bound)
    return w, b


def init_params(key):
    # Decoder: Linear(L[3]->L[2]), Linear(L[2]->L[1]), Linear(L[1]->L[0])
    shapes = [(LAYER_SIZES[i], LAYER_SIZES[i - 1]) for i in range(NUM_LAYERS, 0, -1)]
    keys = jax.random.split(key, len(shapes))
    return [_init_linear(k, fi, fo) for k, (fi, fo) in zip(keys, shapes)]


def prepare_params(raw_params):
    """One-time prep: zero-pad *hidden* feature dims (64 -> 128) so the
    intermediate activations are lane-dense. First fan_in (32, matches x) and
    final fan_out (256) stay unpadded. Weights stay f32 (VMEM-resident)."""
    n = len(raw_params)
    prepared = []
    for li, (w, b) in enumerate(raw_params):
        fi, fo = w.shape
        fi_p = fi if li == 0 else _round_up(fi, LANE)        # keep layer-0 fan_in = 32
        fo_p = fo if li == n - 1 else _round_up(fo, LANE)    # keep final fan_out = 256
        w_p = jnp.zeros((fi_p, fo_p), jnp.float32).at[:fi, :fo].set(w)
        b_p = jnp.zeros((1, fo_p), jnp.float32).at[:, :fo].set(b)
        prepared.extend([w_p, b_p])
    return prepared


# ---------------------------------------------------------------------------
# Batch-tile selection: large tiles (amortize per-step overhead), minimal
# batch padding, and an even number of grid steps when there is more than one
# (v7x has 2 TensorCores sharing the "parallel" batch axis).
# ---------------------------------------------------------------------------
def _choose_tile(batch, tile_b):
    bp8 = _round_up(batch, 8)                        # f32 sublane packing
    if tile_b is None:
        tile_b = 1024 if bp8 >= 16 * 1024 else 512
    if bp8 <= tile_b:
        return bp8                                   # whole batch in one grid step
    n_steps = -(-bp8 // tile_b)
    if bp8 % tile_b == 0 and n_steps % 2 == 0:
        return tile_b
    n_steps = _round_up(max(2, n_steps), 2)          # even step count for v7x
    return _round_up(-(-bp8 // n_steps), 8)          # minimize padded rows


# ---------------------------------------------------------------------------
# Wrapper: batch-gridded pallas_call with VMEM-resident weights.
# ---------------------------------------------------------------------------
def decoder_forward(sample, prepared_params, *, tile_b=None, out_dtype=jnp.float32):
    B, L = sample.shape
    assert L == LATENT
    w0, b0, w1, b1, w2, b2 = prepared_params
    out_dim = w2.shape[1]                            # 256

    tb = _choose_tile(B, tile_b)
    bp = _round_up(B, tb)

    x = sample.astype(jnp.float32)                   # x stays (B, 32): no lane padding
    if bp != B:                                      # pad only when actually needed
        x = jnp.pad(x, ((0, bp - B), (0, 0)))

    def resident(shape):
        # Same block every grid step -> DMA'd once, stays VMEM-resident.
        return pl.BlockSpec(shape, lambda i: (0, 0))

    y = pl.pallas_call(
        decoder_kernel,
        out_shape=jax.ShapeDtypeStruct((bp, out_dim), out_dtype),
        grid_spec=pltpu.PrefetchScalarGridSpec(
            num_scalar_prefetch=0,
            grid=(bp // tb,),
            in_specs=[
                pl.BlockSpec((tb, LATENT), lambda i: (i, 0)),   # (tb, 32) sample tile
                resident(w0.shape), resident(b0.shape),
                resident(w1.shape), resident(b1.shape),
                resident(w2.shape), resident(b2.shape),
            ],
            out_specs=pl.BlockSpec((tb, out_dim), lambda i: (i, 0)),
        ),
        compiler_params=pltpu.CompilerParams(
            dimension_semantics=("parallel",)),      # v7x: batch tiles across 2 TCs
    )(x, w0, b0, w1, b1, w2, b2)
    return y if bp == B else y[:B]


def decoder_reference(sample, raw_params):
    """Pure-JAX f32 reference matching the PyTorch forward."""
    y = sample
    n = len(raw_params)
    for li, (w, b) in enumerate(raw_params):
        y = y @ w + b
        y = jnp.tanh(y) if li < n - 1 else jnp.exp(y)
    return y


if __name__ == "__main__":
    key = jax.random.PRNGKey(0)
    k_param, k_s1, k_s2 = jax.random.split(key, 3)

    raw_params = init_params(k_param)
    prepared = prepare_params(raw_params)

    fwd = jax.jit(decoder_forward)

    # Case 1: aligned batch -> single grid step, no pad / slice copies.
    B1 = 256
    s1 = jax.random.normal(k_s1, (B1, LATENT), jnp.float32)
    y1 = jax.block_until_ready(fwd(s1, prepared))

    # Case 2: ragged batch -> even multi-step grid (4 x 264) + pad/slice path.
    B2 = 1030
    s2 = jax.random.normal(k_s2, (B2, LATENT), jnp.float32)
    y2 = jax.block_until_ready(fwd(s2, prepared))

    for y, s, B in ((y1, s1, B1), (y2, s2, B2)):
        assert y.shape == (B, LAYER_SIZES[0])
        assert bool(jnp.all(jnp.isfinite(y)))
        ref = decoder_reference(s, raw_params)
        assert bool(jnp.allclose(y, ref, rtol=2e-2, atol=1e-3)), \
            float(jnp.max(jnp.abs(y - ref)))

    print("KERNEL_OK")
</pallas_src>

<mosaic_0001>
module attributes {stable_mosaic.version = 11 : i64} {
  func.func @decoder_kernel(%arg0: i32, %arg1: memref<256x32xf32, #tpu.memory_space<vmem>>, %arg2: memref<32x128xf32, #tpu.memory_space<vmem>>, %arg3: memref<1x128xf32, #tpu.memory_space<vmem>>, %arg4: memref<128x128xf32, #tpu.memory_space<vmem>>, %arg5: memref<1x128xf32, #tpu.memory_space<vmem>>, %arg6: memref<128x256xf32, #tpu.memory_space<vmem>>, %arg7: memref<1x256xf32, #tpu.memory_space<vmem>>, %arg8: memref<256x256xf32, #tpu.memory_space<vmem>>) attributes {dimension_semantics = [#tpu.dimension_semantics<parallel>], iteration_bounds = array<i64: 1>, scalar_prefetch = 0 : i64, scratch_operands = 0 : i64, tpu.core_type = #tpu.core_type<tc>, window_params = [{transform_indices = @transform_0, window_bounds = array<i64: 256, 32>}, {pipeline_mode = #tpu.pipeline_mode<synchronous>, transform_indices = @transform_1, window_bounds = array<i64: 32, 128>}, {pipeline_mode = #tpu.pipeline_mode<synchronous>, transform_indices = @transform_2, window_bounds = array<i64: 1, 128>}, {pipeline_mode = #tpu.pipeline_mode<synchronous>, transform_indices = @transform_3, window_bounds = array<i64: 128, 128>}, {pipeline_mode = #tpu.pipeline_mode<synchronous>, transform_indices = @transform_4, window_bounds = array<i64: 1, 128>}, {pipeline_mode = #tpu.pipeline_mode<synchronous>, transform_indices = @transform_5, window_bounds = array<i64: 128, 256>}, {pipeline_mode = #tpu.pipeline_mode<synchronous>, transform_indices = @transform_6, window_bounds = array<i64: 1, 256>}, {transform_indices = @transform_7, window_bounds = array<i64: 256, 256>}]} {
    %c0 = arith.constant 0 : index
    %c0_0 = arith.constant 0 : index
    %0 = vector.load %arg1[%c0, %c0_0] : memref<256x32xf32, #tpu.memory_space<vmem>>, vector<256x32xf32>
    %c0_1 = arith.constant 0 : index
    %c0_2 = arith.constant 0 : index
    %1 = vector.load %arg2[%c0_1, %c0_2] : memref<32x128xf32, #tpu.memory_space<vmem>>, vector<32x128xf32>
    %cst = arith.constant dense<0.000000e+00> : vector<256x128xf32>
    %2 = tpu.matmul %0, %1, %cst {dimension_numbers = #tpu.dot_dimension_numbers<[1], [0], [0], [1], [0, 0, 1, 1], [], []>} : vector<256x32xf32>, vector<32x128xf32>, vector<256x128xf32> -> vector<256x128xf32>
    %c0_3 = arith.constant 0 : index
    %c0_4 = arith.constant 0 : index
    %3 = vector.load %arg3[%c0_3, %c0_4] : memref<1x128xf32, #tpu.memory_space<vmem>>, vector<1x128xf32>
    %4 = vector.broadcast %3 : vector<1x128xf32> to vector<256x128xf32>
    %5 = arith.addf %2, %4 : vector<256x128xf32>
    %6 = math.tanh %5 : vector<256x128xf32>
    %c0_5 = arith.constant 0 : index
    %c0_6 = arith.constant 0 : index
    %7 = vector.load %arg4[%c0_5, %c0_6] : memref<128x128xf32, #tpu.memory_space<vmem>>, vector<128x128xf32>
    %cst_7 = arith.constant dense<0.000000e+00> : vector<256x128xf32>
    %8 = tpu.matmul %6, %7, %cst_7 {dimension_numbers = #tpu.dot_dimension_numbers<[1], [0], [0], [1], [0, 0, 1, 1], [], []>} : vector<256x128xf32>, vector<128x128xf32>, vector<256x128xf32> -> vector<256x128xf32>
    %c0_8 = arith.constant 0 : index
    %c0_9 = arith.constant 0 : index
    %9 = vector.load %arg5[%c0_8, %c0_9] : memref<1x128xf32, #tpu.memory_space<vmem>>, vector<1x128xf32>
    %10 = vector.broadcast %9 : vector<1x128xf32> to vector<256x128xf32>
    %11 = arith.addf %8, %10 : vector<256x128xf32>
    %12 = math.tanh %11 : vector<256x128xf32>
    %c0_10 = arith.constant 0 : index
    %c0_11 = arith.constant 0 : index
    %13 = vector.load %arg6[%c0_10, %c0_11] : memref<128x256xf32, #tpu.memory_space<vmem>>, vector<128x256xf32>
    %cst_12 = arith.constant dense<0.000000e+00> : vector<256x256xf32>
    %14 = tpu.matmul %12, %13, %cst_12 {dimension_numbers = #tpu.dot_dimension_numbers<[1], [0], [0], [1], [0, 0, 1, 1], [], []>} : vector<256x128xf32>, vector<128x256xf32>, vector<256x256xf32> -> vector<256x256xf32>
    %c0_13 = arith.constant 0 : index
    %c0_14 = arith.constant 0 : index
    %15 = vector.load %arg7[%c0_13, %c0_14] : memref<1x256xf32, #tpu.memory_space<vmem>>, vector<1x256xf32>
    %16 = vector.broadcast %15 : vector<1x256xf32> to vector<256x256xf32>
    %17 = arith.addf %14, %16 : vector<256x256xf32>
    %18 = math.exp %17 : vector<256x256xf32>
    %c0_15 = arith.constant 0 : index
    %c0_16 = arith.constant 0 : index
    %19 = vector.load %arg8[%c0_15, %c0_16] : memref<256x256xf32, #tpu.memory_space<vmem>>, vector<256x256xf32>
    tpu.vector_store %arg8[%c0_15, %c0_16], %18 {strides = array<i32>} : memref<256x256xf32, #tpu.memory_space<vmem>>, vector<256x256xf32>,
    return
  }
  func.func @transform_0(%arg0: i32) -> (i32, i32) {
    %c0_i32 = arith.constant 0 : i32
    %c0_i32_0 = arith.constant 0 : i32
    return %arg0, %c0_i32 : i32, i32
  }
  func.func @transform_1(%arg0: i32) -> (i32, i32) {
    %c0_i32 = arith.constant 0 : i32
    %c0_i32_0 = arith.constant 0 : i32
    %c0_i32_1 = arith.constant 0 : i32
    return %c0_i32, %c0_i32_0 : i32, i32
  }
  func.func @transform_2(%arg0: i32) -> (i32, i32) {
    %c0_i32 = arith.constant 0 : i32
    %c0_i32_0 = arith.constant 0 : i32
    %c0_i32_1 = arith.constant 0 : i32
    return %c0_i32, %c0_i32_0 : i32, i32
  }
  func.func @transform_3(%arg0: i32) -> (i32, i32) {
    %c0_i32 = arith.constant 0 : i32
    %c0_i32_0 = arith.constant 0 : i32
    %c0_i32_1 = arith.constant 0 : i32
    return %c0_i32, %c0_i32_0 : i32, i32
  }
  func.func @transform_4(%arg0: i32) -> (i32, i32) {
    %c0_i32 = arith.constant 0 : i32
    %c0_i32_0 = arith.constant 0 : i32
    %c0_i32_1 = arith.constant 0 : i32
    return %c0_i32, %c0_i32_0 : i32, i32
  }
  func.func @transform_5(%arg0: i32) -> (i32, i32) {
    %c0_i32 = arith.constant 0 : i32
    %c0_i32_0 = arith.constant 0 : i32
    %c0_i32_1 = arith.constant 0 : i32
    return %c0_i32, %c0_i32_0 : i32, i32
  }
  func.func @transform_6(%arg0: i32) -> (i32, i32) {
    %c0_i32 = arith.constant 0 : i32
    %c0_i32_0 = arith.constant 0 : i32
    %c0_i32_1 = arith.constant 0 : i32
    return %c0_i32, %c0_i32_0 : i32, i32
  }
  func.func @transform_7(%arg0: i32) -> (i32, i32) {
    %c0_i32 = arith.constant 0 : i32
    %c0_i32_0 = arith.constant 0 : i32
    return %arg0, %c0_i32 : i32, i32
  }
}

</mosaic_0001>

<bundles_post_ra>
// kernel: decoder_forward.1
= control target key start
LH: loop header
LB: loop body
LE: loop exit
PB: predicated region body
PF: predicated region fallthrough
CT: control target
= control target key end

     0   :  { %12 = vsyncpa [#allocation3], 0  ;;  %s2416_s0 = inlined_call_operand.vmem [shape: f32[256,32], index: 0, kind: input, shape index: {}]   ;;  %s2417_s1 = inlined_call_operand.vmem [shape: f32[32,128], index: 1, kind: input, shape index: {}]   ;;  %s2418_s2 = inlined_call_operand.vmem [shape: f32[1,128], index: 2, kind: input, shape index: {}]   ;;  %s2419_s3 = inlined_call_operand.hbm [shape: f32[128,128], index: 3, kind: input, shape index: {}]   ;;  %s2420_s4 = inlined_call_operand.vmem [shape: f32[1,128], index: 4, kind: input, shape index: {}]   ;;  %s2421_s5 = inlined_call_operand.vmem [shape: f32[128,256], index: 5, kind: input, shape index: {}]   ;;  %s2422_s6 = inlined_call_operand.vmem [shape: f32[1,256], index: 6, kind: input, shape index: {}]   ;;  %s2423_s7 = inlined_call_operand.hbm [shape: f32[256,256], index: 7, kind: output, shape index: {}]  }
   0x1   :  { %13 = vsyncpa [#allocation4], 0  ;;  %s1881_s24 = smov [#allocation2]   ;;  %s1833_s28 = scalar_lea.hbm %s2419_s3, 2048 }
   0x2   :  { %s25_s25 = sshll.u32 %s1881_s24, 4  ;;  %p1834_p0 = scmp.ne.s32.totalorder %s2419_s3, %s1833_s28  ;;  %s26_s25 = int_to_ptr.vmem [resolvable:$true] %s25_s25 }
   0x3   :  { %p1837_p1 = scmp.lt.u32.totalorder %s1833_s28, %s2419_s3 }
   0x5   :  { %p1839_p2 = pnand %p1837_p1, %p1834_p0 }
   0x7   :  { %1842 = shalt.err (!%p1839_p2)
}
   0x8   :  { %s1843_s10 = scalar_lea.vmem %s26_s25, 2048  ;;  %p1848_p4 = scmp.lt.s32.totalorder %s26_s25, %s26_s25 }
   0x9   :  { %p1844_p3 = scmp.ne.s32.totalorder %s26_s25, %s1843_s10  ;;  %p1849_p5 = scmp.lt.s32.totalorder %s1843_s10, %s1843_s10 }
   0xb   :  { %p1850_p6 = por %p1849_p5, %p1848_p4 }
   0xd   :  { %p1851_p7 = pnand %p1850_p6, %p1844_p3 }
   0xf   :  { %1854 = shalt.err (!%p1851_p7)
}
  0x10   :  { %s1882_s11 = smov 128   ;;  %s1883_s12 = smov 8  }
  0x11   :  { %31 = dma.hbm_to_vmem [thread:$0]  %s2419_s3, 2048, %s26_s25, [#allocation3], %s1882_s11, %s1882_s11, %s1883_s12  }
  0x12   :  { %1877 = dma.done.wait [#allocation3], 2048  }
  0x13   :  { %1878 = vsyncadd [#allocation3], 4294965248  ;;  %vm84_vm0 = vcmask 261120   ;;  %v73_v0 = vld [vmem:[%s2417_s1] sm:$0xff]  ;;  %v74_v1 = vld [vmem:[%s2417_s1 + $0x8] sm:$0xff] }
  0x14   :  { %v75_v2 = vld [vmem:[%s2417_s1 + $0x10] sm:$0xff]  ;;  %v1482_v3 = vpack.c.bf16 %v74_v1, %v73_v0  ;;  %v76_v4 = vld [vmem:[%s2417_s1 + $0x18] sm:$0xff]  ;;  %v41_v5 = vld [vmem:[%s2416_s0] sm:$0xff] }
  0x15   :  { %v1486_v6 = vpack.c.bf16 %v76_v4, %v75_v2  ;;  %1354 = vmatprep.mubr.msk.f32.mxu0 %vm84_vm0, %v41_v5  ;;  %v42_v7 = vld [vmem:[%s2416_s0 + $0x8] sm:$0xff]  ;;  %v43_v8 = vld [vmem:[%s2416_s0 + $0x10] sm:$0xff]  ;;  %v44_v9 = vld [vmem:[%s2416_s0 + $0x18] sm:$0xff] }
  0x16   :  { %1483 = vmatprep.subr.bf16.mxu0 %v1482_v3  ;;  %v438_v10 = vld [vmem:[#allocation2] sm:$0xff]  ;;  %v439_v11 = vld [vmem:[#allocation2 + $0x8] sm:$0xff]  ;;  %v440_v12 = vld [vmem:[#allocation2 + $0x10] sm:$0xff] }
  0x17   :  { %1485 = vmatpush3.bf16.msra.mxu0 %v1482_v3  ;;  %v45_v13 = vld [vmem:[%s2416_s0 + $0x20] sm:$0xff]  ;;  %v1490_v14 = vpack.c.bf16 %v439_v11, %v438_v10  ;;  %v441_v15 = vld [vmem:[#allocation2 + $0x18] sm:$0xff]  ;;  %v443_v18 = vld [vmem:[#allocation2 + $0x28] sm:$0xff] }
  0x18   :  { %1487 = vmatprep.subr.bf16.mxu0 %v1486_v6  ;;  %v1494_v16 = vpack.c.bf16 %v441_v15, %v440_v12  ;;  %v442_v17 = vld [vmem:[#allocation2 + $0x20] sm:$0xff]  ;;  %v46_v19 = vld [vmem:[%s2416_s0 + $0x28] sm:$0xff]  ;;  %v47_v20 = vld [vmem:[%s2416_s0 + $0x30] sm:$0xff] }
  0x19   :  { %1491 = vmatprep.subr.bf16.mxu1 %v1490_v14  ;;  %v1498_v21 = vpack.c.bf16 %v443_v18, %v442_v17  ;;  %v444_v22 = vld [vmem:[#allocation2 + $0x30] sm:$0xff]  ;;  %v445_v23 = vld [vmem:[#allocation2 + $0x38] sm:$0xff]  ;;  %v49_v25 = vld [vmem:[%s2416_s0 + $0x40] sm:$0xff] }
  0x1a   :  { %1493 = vmatpush3.bf16.msra.mxu1 %v1490_v14  ;;  %v48_v24 = vld [vmem:[%s2416_s0 + $0x38] sm:$0xff]  ;;  %v1502_v26 = vpack.c.bf16 %v445_v23, %v444_v22  ;;  %v50_v27 = vld [vmem:[%s2416_s0 + $0x48] sm:$0xff]  ;;  %v51_v28 = vld [vmem:[%s2416_s0 + $0x50] sm:$0xff] }
  0x1b   :  { %1489 = vmatpush3.bf16.msra.mxu0 %v1486_v6  ;;  %1495 = vmatprep.subr.bf16.mxu1 %v1494_v16  ;;  %v52_v29 = vld [vmem:[%s2416_s0 + $0x58] sm:$0xff]  ;;  %v53_v30 = vld [vmem:[%s2416_s0 + $0x60] sm:$0xff]  ;;  %v54_v31 = vld [vmem:[%s2416_s0 + $0x68] sm:$0xff] }
  0x1c   :  { %v55_v32 = vld [vmem:[%s2416_s0 + $0x70] sm:$0xff]  ;;  %v56_v33 = vld [vmem:[%s2416_s0 + $0x78] sm:$0xff]  ;;  %v57_v34 = vld [vmem:[%s2416_s0 + $0x80] sm:$0xff] }
  0x1d   :  { %v58_v35 = vld [vmem:[%s2416_s0 + $0x88] sm:$0xff]  ;;  %v59_v36 = vld [vmem:[%s2416_s0 + $0x90] sm:$0xff]  ;;  %v60_v37 = vld [vmem:[%s2416_s0 + $0x98] sm:$0xff] }
  0x1e   :  { %1355 = vmatmul.mubr.msk.f32.vlgmr.msra.gmra.mrb[0].mxu0 %vm84_vm0, %v42_v7  ;;  %1497 = vmatpush3.bf16.msra.mxu1 %v1494_v16  ;;  %v61_v38 = vld [vmem:[%s2416_s0 + $0xa0] sm:$0xff]  ;;  %v62_v39 = vld [vmem:[%s2416_s0 + $0xa8] sm:$0xff]  ;;  %v63_v40 = vld [vmem:[%s2416_s0 + $0xb0] sm:$0xff] }
  0x1f   :  { %1357 = vmatprep.mubr.msk.f32.mxu0 %vm84_vm0, %v43_v8  ;;  %1499 = vmatprep.subr.bf16.mxu1 %v1498_v21  ;;  %v64_v41 = vld [vmem:[%s2416_s0 + $0xb8] sm:$0xff]  ;;  %v65_v42 = vld [vmem:[%s2416_s0 + $0xc0] sm:$0xff]  ;;  %v66_v43 = vld [vmem:[%s2416_s0 + $0xc8] sm:$0xff] }
  0x20   :  { %v67_v44 = vld [vmem:[%s2416_s0 + $0xd0] sm:$0xff]  ;;  %v68_v45 = vld [vmem:[%s2416_s0 + $0xd8] sm:$0xff]  ;;  %v69_v46 = vld [vmem:[%s2416_s0 + $0xe0] sm:$0xff] }
  0x21   :  { %v70_v47 = vld [vmem:[%s2416_s0 + $0xe8] sm:$0xff]  ;;  %v71_v48 = vld [vmem:[%s2416_s0 + $0xf0] sm:$0xff]  ;;  %v72_v49 = vld [vmem:[%s2416_s0 + $0xf8] sm:$0xff] }
  0x22   :  { %1358 = vmatmul.mubr.msk.f32.gmra.mrb[2].mxu0 %vm84_vm0, %v44_v9  ;;  %1501 = vmatpush3.bf16.msra.mxu1 %v1498_v21  ;;  %v446_v50 = vld [vmem:[#allocation2 + $0x40] sm:$0xff]  ;;  %v447_v51 = vld [vmem:[#allocation2 + $0x48] sm:$0xff]  ;;  %v448_v53 = vld [vmem:[#allocation2 + $0x50] sm:$0xff] }
  0x23   :  { %1360 = vmatprep.mubr.msk.f32.mxu0 %vm84_vm0, %v45_v13  ;;  %1503 = vmatprep.subr.bf16.mxu1 %v1502_v26  ;;  %v1506_v52 = vpack.c.bf16 %v447_v51, %v446_v50  ;;  %v449_v54 = vld [vmem:[#allocation2 + $0x58] sm:$0xff]  ;;  %v450_v56 = vld [vmem:[#allocation2 + $0x60] sm:$0xff]  ;;  %v451_v57 = vld [vmem:[#allocation2 + $0x68] sm:$0xff] }
  0x24   :  { %v1510_v55 = vpack.c.bf16 %v449_v54, %v448_v53  ;;  %v1514_v58 = vpack.c.bf16 %v451_v57, %v450_v56  ;;  %v452_v59 = vld [vmem:[#allocation2 + $0x70] sm:$0xff]  ;;  %v453_v60 = vld [vmem:[#allocation2 + $0x78] sm:$0xff]  ;;  %v719_v62 = vld [vmem:[%s2421_s5 + $0x8] sm:$0xff] }
  0x25   :  { %v1518_v61 = vpack.c.bf16 %v453_v60, %v452_v59  ;;  %v721_v63 = vld [vmem:[%s2421_s5 + $0x18] sm:$0xff]  ;;  %v718_v0 = vld [vmem:[%s2421_s5] sm:$0xff]  ;;  %v720_v2 = vld [vmem:[%s2421_s5 + $0x10] sm:$0xff] }
  0x26   :  { %1361 = vmatmul.mubr.msk.f32.gmra.mrb[4].mxu0 %vm84_vm0, %v46_v19  ;;  %1505 = vmatpush3.bf16.msra.mxu1 %v1502_v26  ;;  %v1522_v1 = vpack.c.bf16 %v721_v63, %v719_v62  ;;  %v723_v3 = vld [vmem:[%s2421_s5 + $0x28] sm:$0xff]  ;;  %v725_v4 = vld [vmem:[%s2421_s5 + $0x38] sm:$0xff]  ;;  %v2098_v5 = vpack.c.bf16 %v720_v2, %v718_v0  ;;  %v722_v7 = vld [vmem:[%s2421_s5 + $0x20] sm:$0xff] }
  0x27   :  { %1363 = vmatprep.mubr.msk.f32.mxu0 %vm84_vm0, %v47_v20  ;;  %1507 = vmatprep.subr.bf16.mxu1 %v1506_v52  ;;  %v2100_v6 = vpack.c.bf16 %v725_v4, %v723_v3  ;;  %v724_v8 = vld [vmem:[%s2421_s5 + $0x30] sm:$0xff]  ;;  %v727_v9 = vld [vmem:[%s2421_s5 + $0x48] sm:$0xff]  ;;  %v729_v10 = vld [vmem:[%s2421_s5 + $0x58] sm:$0xff] }
  0x28   :  { %1523 = vmatprep.subr.bf16.mxu0 %v1522_v1  ;;  %v2115_v11 = vpack.c.bf16 %v724_v8, %v722_v7  ;;  %v2118_v12 = vpack.c.bf16 %v729_v10, %v727_v9  ;;  %v726_v13 = vld [vmem:[%s2421_s5 + $0x40] sm:$0xff]  ;;  %v728_v14 = vld [vmem:[%s2421_s5 + $0x50] sm:$0xff]  ;;  %v731_v15 = vld [vmem:[%s2421_s5 + $0x68] sm:$0xff] }
  0x29   :  { %1525 = vmatpush1.bf16.msra.mxu0 %v2098_v5  ;;  %v733_v16 = vld [vmem:[%s2421_s5 + $0x78] sm:$0xff]  ;;  %v2133_v17 = vpack.c.bf16 %v728_v14, %v726_v13  ;;  %v730_v19 = vld [vmem:[%s2421_s5 + $0x60] sm:$0xff]  ;;  %v732_v20 = vld [vmem:[%s2421_s5 + $0x70] sm:$0xff] }
  0x2a   :  { %1364 = vmatmul.mubr.msk.f32.gmra.mrb[6].mxu0 %vm84_vm0, %v48_v24  ;;  %1509 = vmatpush3.bf16.msra.mxu1 %v1506_v52  ;;  %v2136_v18 = vpack.c.bf16 %v733_v16, %v731_v15  ;;  %v735_v21 = vld [vmem:[%s2421_s5 + $0x88] sm:$0xff]  ;;  %v737_v22 = vld [vmem:[%s2421_s5 + $0x98] sm:$0xff]  ;;  %v2151_v23 = vpack.c.bf16 %v732_v20, %v730_v19  ;;  %v736_v26 = vld [vmem:[%s2421_s5 + $0x90] sm:$0xff] }
  0x2b   :  { %1366 = vmatprep.mubr.msk.f32.mxu0 %vm84_vm0, %v49_v25  ;;  %1511 = vmatprep.subr.bf16.mxu1 %v1510_v55  ;;  %v2154_v24 = vpack.c.bf16 %v737_v22, %v735_v21  ;;  %v734_v25 = vld [vmem:[%s2421_s5 + $0x80] sm:$0xff] }
  0x2c   :  { %1527 = vmatprep.subr.bf16.mxu0 %v2100_v6 }
  0x2d   :  { %1529 = vmatpush1.bf16.msra.mxu0 %v2115_v11 }
  0x2e   :  { %1367 = vmatmul.mubr.msk.f32.gmra.mrb[8].mxu0 %vm84_vm0, %v50_v27  ;;  %1513 = vmatpush3.bf16.msra.mxu1 %v1510_v55  ;;  %v2163_v27 = vpack.c.bf16 %v736_v26, %v734_v25 }
  0x2f   :  { %1369 = vmatprep.mubr.msk.f32.mxu0 %vm84_vm0, %v51_v28  ;;  %1515 = vmatprep.subr.bf16.mxu1 %v1514_v58  ;;  %v2170_v28 = vld [vmem:[%s2418_s2] ss:$0 sm:$0xff] }
  0x30   :  { %1531 = vmatprep.subr.bf16.mxu0 %v2118_v12 }
  0x31   :  { %1533 = vmatpush1.bf16.msra.mxu0 %v2133_v17 }
  0x32   :  { %1370 = vmatmul.mubr.msk.f32.gmra.mrb[10].mxu0 %vm84_vm0, %v52_v29  ;;  %1517 = vmatpush3.bf16.msra.mxu1 %v1514_v58 }
  0x33   :  { %1372 = vmatprep.mubr.msk.f32.mxu0 %vm84_vm0, %v53_v30  ;;  %1519 = vmatprep.subr.bf16.mxu1 %v1518_v61 }
  0x34   :  { %1535 = vmatprep.subr.bf16.mxu0 %v2136_v18 }
  0x35   :  { %1537 = vmatpush1.bf16.msra.mxu0 %v2151_v23 }
  0x36   :  { %1373 = vmatmul.mubr.msk.f32.gmra.mrb[12].mxu0 %vm84_vm0, %v54_v31  ;;  %1521 = vmatpush3.bf16.msra.mxu1 %v1518_v61 }
  0x37   :  { %1375 = vmatprep.mubr.msk.f32.mxu0 %vm84_vm0, %v55_v32  ;;  %1554 = vmatprep.subr.bf16.mxu1 %v1522_v1 }
  0x38   :  { %1539 = vmatprep.subr.bf16.mxu0 %v2154_v24 }
  0x39   :  { %1541 = vmatpush1.bf16.msra.mxu0 %v2163_v27 }
  0x3a   :  { %1376 = vmatmul.mubr.msk.f32.gmra.mrb[14].mxu0 %vm84_vm0, %v56_v33 }
  0x3b   :  { %1378 = vmatprep.mubr.msk.f32.mxu0 %vm84_vm0, %v57_v34 }
  0x3e   :  { %1379 = vmatmul.mubr.msk.f32.gmra.mrb[16].mxu0 %vm84_vm0, %v58_v35 }
  0x3f   :  { %1381 = vmatprep.mubr.msk.f32.mxu0 %vm84_vm0, %v59_v36 }
  0x42   :  { %1382 = vmatmul.mubr.msk.f32.gmra.mrb[18].mxu0 %vm84_vm0, %v60_v37 }
  0x43   :  { %1384 = vmatprep.mubr.msk.f32.mxu0 %vm84_vm0, %v61_v38 }
  0x46   :  { %1385 = vmatmul.mubr.msk.f32.gmra.mrb[20].mxu0 %vm84_vm0, %v62_v39 }
  0x47   :  { %1387 = vmatprep.mubr.msk.f32.mxu0 %vm84_vm0, %v63_v40 }
  0x4a   :  { %1388 = vmatmul.mubr.msk.f32.gmra.mrb[22].mxu0 %vm84_vm0, %v64_v41 }
  0x4b   :  { %1390 = vmatprep.mubr.msk.f32.mxu0 %vm84_vm0, %v65_v42 }
  0x4e   :  { %1391 = vmatmul.mubr.msk.f32.gmra.mrb[24].mxu0 %vm84_vm0, %v66_v43 }
  0x4f   :  { %1393 = vmatprep.mubr.msk.f32.mxu0 %vm84_vm0, %v67_v44 }
  0x52   :  { %1394 = vmatmul.mubr.msk.f32.gmra.mrb[26].mxu0 %vm84_vm0, %v68_v45 }
  0x53   :  { %1396 = vmatprep.mubr.msk.f32.mxu0 %vm84_vm0, %v69_v46 }
  0x56   :  { %1397 = vmatmul.mubr.msk.f32.gmra.mrb[28].mxu0 %vm84_vm0, %v70_v47 }
  0x57   :  { %1399 = vmatprep.mubr.msk.f32.mxu0 %vm84_vm0, %v71_v48 }
  0x5a   :  { %1400 = vmatmul.mubr.msk.f32.gmra.mrb[30].mxu0 %vm84_vm0, %v72_v49 }
  0xf1   :  { %v1356_v29 = vpop.f32.mrb[0].mxu0 }
  0xf2   :  { %v253_v30 = vadd.f32 %v1356_v29, %v2170_v28  ;;  %v247_v31 = vpop.f32.mrb[1].mxu0 }
  0xf3   :  { %v248_v32 = vadd.f32 %v2170_v28, %v247_v31 }
  0xf5   :  { %1577 = vtanh.f32 %v248_v32  ;;  %v1359_v33 = vpop.f32.mrb[2].mxu0 }
  0xf6   :  { %1579 = vtanh.f32 %v253_v30  ;;  %v263_v34 = vadd.f32 %v1359_v33, %v2170_v28  ;;  %v257_v35 = vpop.f32.mrb[3].mxu0 }
  0xf7   :  { %v258_v36 = vadd.f32 %v2170_v28, %v257_v35 }
  0xf9   :  { %1581 = vtanh.f32 %v258_v36  ;;  %v1362_v37 = vpop.f32.mrb[4].mxu0 }
  0xfa   :  { %1583 = vtanh.f32 %v263_v34  ;;  %v273_v38 = vadd.f32 %v1362_v37, %v2170_v28  ;;  %v267_v39 = vpop.f32.mrb[5].mxu0 }
  0xfb   :  { %v268_v40 = vadd.f32 %v2170_v28, %v267_v39 }
  0xfd   :  { %1585 = vtanh.f32 %v268_v40  ;;  %v1365_v41 = vpop.f32.mrb[6].mxu0 }
  0xfe   :  { %1587 = vtanh.f32 %v273_v38  ;;  %v283_v42 = vadd.f32 %v1365_v41, %v2170_v28  ;;  %v277_v43 = vpop.f32.mrb[7].mxu0 }
  0xff   :  { %v1578_v44 = vpop.eup %1577  ;;  %v278_v45 = vadd.f32 %v2170_v28, %v277_v43 }
 0x100   :  { %v1580_v46 = vpop.eup %1579  ;;  %1434 = vmatprep.mubr.f32.mxu1 %v1578_v44 }
 0x101   :  { %1589 = vtanh.f32 %v278_v45  ;;  %v1368_v47 = vpop.f32.mrb[8].mxu0  ;;  %1435 = vmatmul.mubr.f32.vlgmr.msra.gmra.mrb[0].mxu1 %v1580_v46 }
 0x102   :  { %1591 = vtanh.f32 %v283_v42  ;;  %v293_v48 = vadd.f32 %v1368_v47, %v2170_v28  ;;  %v287_v49 = vpop.f32.mrb[9].mxu0  ;;  %1562 = vmatpush1.bf16.msra.mxu1 %v2098_v5 }
 0x103   :  { %v1582_v50 = vpop.eup %1581  ;;  %v288_v51 = vadd.f32 %v2170_v28, %v287_v49  ;;  %1555 = vmatprep.subr.bf16.mxu1 %v2100_v6 }
 0x104   :  { %v1584_v52 = vpop.eup %1583  ;;  %1437 = vmatprep.mubr.f32.mxu1 %v1582_v50 }
 0x105   :  { %1593 = vtanh.f32 %v288_v51  ;;  %v1371_v53 = vpop.f32.mrb[10].mxu0  ;;  %1438 = vmatmul.mubr.f32.gmra.mrb[2].mxu1 %v1584_v52 }
 0x106   :  { %1595 = vtanh.f32 %v293_v48  ;;  %v303_v54 = vadd.f32 %v1371_v53, %v2170_v28  ;;  %v297_v55 = vpop.f32.mrb[11].mxu0  ;;  %1563 = vmatpush1.bf16.msra.mxu1 %v2115_v11 }
 0x107   :  { %v1586_v56 = vpop.eup %1585  ;;  %v298_v57 = vadd.f32 %v2170_v28, %v297_v55  ;;  %1556 = vmatprep.subr.bf16.mxu1 %v2118_v12 }
 0x108   :  { %v1588_v58 = vpop.eup %1587  ;;  %1440 = vmatprep.mubr.f32.mxu1 %v1586_v56 }
 0x109   :  { %1597 = vtanh.f32 %v298_v57  ;;  %v1374_v59 = vpop.f32.mrb[12].mxu0  ;;  %1441 = vmatmul.mubr.f32.gmra.mrb[4].mxu1 %v1588_v58 }
 0x10a   :  { %1599 = vtanh.f32 %v303_v54  ;;  %v313_v60 = vadd.f32 %v1374_v59, %v2170_v28  ;;  %v307_v61 = vpop.f32.mrb[13].mxu0  ;;  %1564 = vmatpush1.bf16.msra.mxu1 %v2133_v17 }
 0x10b   :  { %v1590_v62 = vpop.eup %1589  ;;  %v308_v63 = vadd.f32 %v2170_v28, %v307_v61  ;;  %1557 = vmatprep.subr.bf16.mxu1 %v2136_v18 }
 0x10c   :  { %v1592_v0 = vpop.eup %1591  ;;  %1443 = vmatprep.mubr.f32.mxu1 %v1590_v62  ;;  %v741_v62 = vld [vmem:[%s2421_s5 + $0xb8] sm:$0xff] }
 0x10d   :  { %1601 = vtanh.f32 %v308_v63  ;;  %v1377_v1 = vpop.f32.mrb[14].mxu0  ;;  %1444 = vmatmul.mubr.f32.gmra.mrb[6].mxu1 %v1592_v0  ;;  %v738_v0 = vld [vmem:[%s2421_s5 + $0xa0] sm:$0xff] }
 0x10e   :  { %1603 = vtanh.f32 %v313_v60  ;;  %v323_v2 = vadd.f32 %v1377_v1, %v2170_v28  ;;  %v317_v3 = vpop.f32.mrb[15].mxu0  ;;  %1565 = vmatpush1.bf16.msra.mxu1 %v2151_v23  ;;  %v740_v1 = vld [vmem:[%s2421_s5 + $0xb0] sm:$0xff] }
 0x10f   :  { %v1594_v4 = vpop.eup %1593  ;;  %v318_v5 = vadd.f32 %v2170_v28, %v317_v3  ;;  %1558 = vmatprep.subr.bf16.mxu1 %v2154_v24  ;;  %v743_v3 = vld [vmem:[%s2421_s5 + $0xc8] sm:$0xff] }
 0x110   :  { %v1596_v6 = vpop.eup %1595  ;;  %1446 = vmatprep.mubr.f32.mxu1 %v1594_v4  ;;  %v745_v4 = vld [vmem:[%s2421_s5 + $0xd8] sm:$0xff] }
 0x111   :  { %1605 = vtanh.f32 %v318_v5  ;;  %v1380_v7 = vpop.f32.mrb[16].mxu0  ;;  %1447 = vmatmul.mubr.f32.gmra.mrb[8].mxu1 %v1596_v6  ;;  %v1546_v5 = vpack.c.bf16 %v745_v4, %v743_v3  ;;  %v742_v6 = vld [vmem:[%s2421_s5 + $0xc0] sm:$0xff] }
 0x112   :  { %1607 = vtanh.f32 %v323_v2  ;;  %v333_v8 = vadd.f32 %v1380_v7, %v2170_v28  ;;  %v327_v9 = vpop.f32.mrb[17].mxu0  ;;  %1566 = vmatpush1.bf16.msra.mxu1 %v2163_v27  ;;  %v1544_v2 = vpack.c.bf16 %v740_v1, %v738_v0  ;;  %v744_v7 = vld [vmem:[%s2421_s5 + $0xd0] sm:$0xff] }
 0x113   :  { %v1598_v10 = vpop.eup %1597  ;;  %v328_v11 = vadd.f32 %v2170_v28, %v327_v9  ;;  %v747_v9 = vld [vmem:[%s2421_s5 + $0xe8] sm:$0xff] }
 0x114   :  { %v1600_v12 = vpop.eup %1599  ;;  %1449 = vmatprep.mubr.f32.mxu1 %v1598_v10  ;;  %v749_v10 = vld [vmem:[%s2421_s5 + $0xf8] sm:$0xff] }
 0x115   :  { %1609 = vtanh.f32 %v328_v11  ;;  %v1383_v13 = vpop.f32.mrb[18].mxu0  ;;  %1450 = vmatmul.mubr.f32.gmra.mrb[10].mxu1 %v1600_v12  ;;  %v1550_v11 = vpack.c.bf16 %v749_v10, %v747_v9  ;;  %v746_v12 = vld [vmem:[%s2421_s5 + $0xe0] sm:$0xff] }
 0x116   :  { %1611 = vtanh.f32 %v333_v8  ;;  %v343_v14 = vadd.f32 %v1383_v13, %v2170_v28  ;;  %v337_v15 = vpop.f32.mrb[19].mxu0  ;;  %v1548_v8 = vpack.c.bf16 %v744_v7, %v742_v6  ;;  %v748_v13 = vld [vmem:[%s2421_s5 + $0xf0] sm:$0xff] }
 0x117   :  { %v1602_v16 = vpop.eup %1601  ;;  %v338_v17 = vadd.f32 %v2170_v28, %v337_v15  ;;  %v1884_v15 = vmov 0.0  }
 0x118   :  { %v1604_v18 = vpop.eup %1603  ;;  %1452 = vmatprep.mubr.f32.mxu1 %v1602_v16  ;;  %826 = vmatprep.mubr.f32.mxu0 %v1884_v15  ;;  %v2254_v16 = vld [vmem:[%s2420_s4] ss:$0 sm:$0xff] }
 0x119   :  { %1613 = vtanh.f32 %v338_v17  ;;  %v1386_v19 = vpop.f32.mrb[20].mxu0  ;;  %1453 = vmatmul.mubr.f32.gmra.mrb[12].mxu1 %v1604_v18 }
 0x11a   :  { %1615 = vtanh.f32 %v343_v14  ;;  %v353_v20 = vadd.f32 %v1386_v19, %v2170_v28  ;;  %v347_v21 = vpop.f32.mrb[21].mxu0  ;;  %v1552_v14 = vpack.c.bf16 %v748_v13, %v746_v12 }
 0x11b   :  { %v1606_v22 = vpop.eup %1605  ;;  %v348_v23 = vadd.f32 %v2170_v28, %v347_v21 }
 0x11c   :  { %v1608_v24 = vpop.eup %1607  ;;  %1455 = vmatprep.mubr.f32.mxu1 %v1606_v22 }
 0x11d   :  { %1617 = vtanh.f32 %v348_v23  ;;  %1456 = vmatmul.mubr.f32.gmra.mrb[14].mxu1 %v1608_v24  ;;  %v1389_v25 = vpop.f32.mrb[22].mxu0 }
 0x11e   :  { %1619 = vtanh.f32 %v353_v20  ;;  %v363_v26 = vadd.f32 %v1389_v25, %v2170_v28  ;;  %v357_v27 = vpop.f32.mrb[23].mxu0 }
 0x11f   :  { %v1610_v29 = vpop.eup %1609  ;;  %v358_v30 = vadd.f32 %v2170_v28, %v357_v27 }
 0x120   :  { %v1612_v31 = vpop.eup %1611  ;;  %1621 = vtanh.f32 %v363_v26  ;;  %1458 = vmatprep.mubr.f32.mxu1 %v1610_v29 }
 0x121   :  { %1623 = vtanh.f32 %v358_v30  ;;  %1459 = vmatmul.mubr.f32.gmra.mrb[16].mxu1 %v1612_v31  ;;  %v1392_v32 = vpop.f32.mrb[24].mxu0 }
 0x122   :  { %v373_v33 = vadd.f32 %v1392_v32, %v2170_v28  ;;  %v367_v34 = vpop.f32.mrb[25].mxu0 }
 0x123   :  { %v1614_v35 = vpop.eup %1613  ;;  %v368_v36 = vadd.f32 %v2170_v28, %v367_v34 }
 0x124   :  { %v1616_v37 = vpop.eup %1615  ;;  %1461 = vmatprep.mubr.f32.mxu1 %v1614_v35  ;;  %1625 = vtanh.f32 %v373_v33 }
 0x125   :  { %1462 = vmatmul.mubr.f32.gmra.mrb[18].mxu1 %v1616_v37  ;;  %1627 = vtanh.f32 %v368_v36  ;;  %v1395_v38 = vpop.f32.mrb[26].mxu0 }
 0x126   :  { %v383_v39 = vadd.f32 %v1395_v38, %v2170_v28  ;;  %v377_v40 = vpop.f32.mrb[27].mxu0 }
 0x127   :  { %v1618_v41 = vpop.eup %1617  ;;  %v378_v42 = vadd.f32 %v2170_v28, %v377_v40 }
 0x128   :  { %v1620_v43 = vpop.eup %1619  ;;  %1464 = vmatprep.mubr.f32.mxu1 %v1618_v41  ;;  %1629 = vtanh.f32 %v383_v39 }
 0x129   :  { %1465 = vmatmul.mubr.f32.gmra.mrb[20].mxu1 %v1620_v43  ;;  %1631 = vtanh.f32 %v378_v42  ;;  %v1398_v44 = vpop.f32.mrb[28].mxu0 }
 0x12a   :  { %v1622_v45 = vpop.eup %1621  ;;  %v393_v46 = vadd.f32 %v1398_v44, %v2170_v28  ;;  %v387_v47 = vpop.f32.mrb[29].mxu0 }
 0x12b   :  { %v1624_v48 = vpop.eup %1623  ;;  %v388_v49 = vadd.f32 %v2170_v28, %v387_v47 }
 0x12c   :  { %1467 = vmatprep.mubr.f32.mxu1 %v1624_v48  ;;  %1633 = vtanh.f32 %v393_v46 }
 0x12d   :  { %1468 = vmatmul.mubr.f32.gmra.mrb[22].mxu1 %v1622_v45  ;;  %1635 = vtanh.f32 %v388_v49  ;;  %v1401_v50 = vpop.f32.mrb[30].mxu0 }
 0x12e   :  { %v1626_v51 = vpop.eup %1625  ;;  %v403_v52 = vadd.f32 %v1401_v50, %v2170_v28  ;;  %v397_v53 = vpop.f32.mrb[31].mxu0 }
 0x12f   :  { %v1628_v54 = vpop.eup %1627  ;;  %v398_v55 = vadd.f32 %v2170_v28, %v397_v53  ;;  %v739_v28 = vld [vmem:[%s2421_s5 + $0xa8] sm:$0xff] }
 0x130   :  { %1470 = vmatprep.mubr.f32.mxu1 %v1628_v54  ;;  %1637 = vtanh.f32 %v403_v52  ;;  %v1542_v63 = vpack.c.bf16 %v741_v62, %v739_v28 }
 0x131   :  { %1471 = vmatmul.mubr.f32.gmra.mrb[24].mxu1 %v1626_v51  ;;  %1639 = vtanh.f32 %v398_v55 }
 0x132   :  { %v1630_v56 = vpop.eup %1629  ;;  %1543 = vmatprep.subr.bf16.mxu0 %v1542_v63  ;;  %1559 = vmatprep.subr.bf16.mxu1 %v1542_v63 }
 0x133   :  { %v1632_v57 = vpop.eup %1631  ;;  %1545 = vmatpush1.bf16.msra.mxu0 %v1544_v2  ;;  %1567 = vmatpush1.bf16.msra.mxu1 %v1544_v2 }
 0x134   :  { %1473 = vmatprep.mubr.f32.mxu1 %v1632_v57  ;;  %1547 = vmatprep.subr.bf16.mxu0 %v1546_v5 }
 0x135   :  { %1474 = vmatmul.mubr.f32.gmra.mrb[26].mxu1 %v1630_v56  ;;  %1560 = vmatprep.subr.bf16.mxu1 %v1546_v5 }
 0x136   :  { %v1634_v58 = vpop.eup %1633 }
 0x137   :  { %v1636_v59 = vpop.eup %1635  ;;  %1549 = vmatpush1.bf16.msra.mxu0 %v1548_v8  ;;  %1568 = vmatpush1.bf16.msra.mxu1 %v1548_v8 }
 0x138   :  { %1476 = vmatprep.mubr.f32.mxu1 %v1636_v59  ;;  %1551 = vmatprep.subr.bf16.mxu0 %v1550_v11 }
 0x139   :  { %1477 = vmatmul.mubr.f32.gmra.mrb[28].mxu1 %v1634_v58  ;;  %1561 = vmatprep.subr.bf16.mxu1 %v1550_v11 }
 0x13a   :  { %v1638_v60 = vpop.eup %1637 }
 0x13b   :  { %v1640_v61 = vpop.eup %1639  ;;  %1553 = vmatpush1.bf16.msra.mxu0 %v1552_v14  ;;  %1569 = vmatpush1.bf16.msra.mxu1 %v1552_v14 }
 0x13c   :  { %1479 = vmatprep.mubr.f32.mxu1 %v1640_v61 }
 0x13d   :  { %1480 = vmatmul.mubr.f32.gmra.mrb[30].mxu1 %v1638_v60 }
 0x13e   :  { %940 = vmatprep.mubr.f32.mxu1 %v1884_v15 }
 0x1d4   :  { %v1436_v17 = vpop.f32.mrb[0].mxu1 }
 0x1d5   :  { %v527_v18 = vpop.f32.mrb[1].mxu1  ;;  %v533_v20 = vadd.f32 %v1436_v17, %v2254_v16 }
 0x1d6   :  { %v528_v19 = vadd.f32 %v2254_v16, %v527_v18 }
 0x1d8   :  { %1641 = vtanh.f32 %v528_v19  ;;  %v1439_v21 = vpop.f32.mrb[2].mxu1 }
 0x1d9   :  { %v537_v22 = vpop.f32.mrb[3].mxu1  ;;  %1643 = vtanh.f32 %v533_v20  ;;  %v543_v26 = vadd.f32 %v1439_v21, %v2254_v16 }
 0x1da   :  { %v538_v23 = vadd.f32 %v2254_v16, %v537_v22 }
 0x1dc   :  { %v1442_v24 = vpop.f32.mrb[4].mxu1  ;;  %1645 = vtanh.f32 %v538_v23 }
 0x1dd   :  { %v547_v25 = vpop.f32.mrb[5].mxu1  ;;  %1647 = vtanh.f32 %v543_v26  ;;  %v553_v35 = vadd.f32 %v1442_v24, %v2254_v16 }
 0x1de   :  { %v548_v31 = vadd.f32 %v2254_v16, %v547_v25 }
 0x1e0   :  { %v1445_v27 = vpop.f32.mrb[6].mxu1  ;;  %1649 = vtanh.f32 %v548_v31 }
 0x1e1   :  { %v557_v29 = vpop.f32.mrb[7].mxu1  ;;  %1651 = vtanh.f32 %v553_v35  ;;  %v563_v43 = vadd.f32 %v1445_v27, %v2254_v16 }
 0x1e2   :  { %v1642_v30 = vpop.eup %1641  ;;  %v558_v39 = vadd.f32 %v2254_v16, %v557_v29 }
 0x1e3   :  { %827 = vmatmul.mubr.f32.vlgmr.msra.gmra.mrb[32].mxu0 %v1642_v30  ;;  %v1644_v34 = vpop.eup %1643 }
 0x1e4   :  { %v1448_v32 = vpop.f32.mrb[8].mxu1  ;;  %832 = vmatprep.mubr.f32.mxu0 %v1884_v15  ;;  %1653 = vtanh.f32 %v558_v39 }
 0x1e5   :  { %v567_v33 = vpop.f32.mrb[9].mxu1  ;;  %1655 = vtanh.f32 %v563_v43  ;;  %v573_v53 = vadd.f32 %v1448_v32, %v2254_v16 }
 0x1e6   :  { %v1646_v38 = vpop.eup %1645  ;;  %v568_v47 = vadd.f32 %v2254_v16, %v567_v33 }
 0x1e7   :  { %833 = vmatmul.mubr.f32.gmra.mrb[34].mxu0 %v1644_v34  ;;  %v1648_v42 = vpop.eup %1647 }
 0x1e8   :  { %v1451_v36 = vpop.f32.mrb[10].mxu1  ;;  %838 = vmatprep.mubr.f32.mxu0 %v1884_v15  ;;  %1657 = vtanh.f32 %v568_v47 }
 0x1e9   :  { %v577_v37 = vpop.f32.mrb[11].mxu1  ;;  %v583_v63 = vadd.f32 %v1451_v36, %v2254_v16 }
 0x1ea   :  { %v1650_v46 = vpop.eup %1649  ;;  %v578_v59 = vadd.f32 %v2254_v16, %v577_v37 }
 0x1eb   :  { %839 = vmatmul.mubr.f32.gmra.mrb[36].mxu0 %v1646_v38  ;;  %v1652_v51 = vpop.eup %1651 }
 0x1ec   :  { %v1454_v40 = vpop.f32.mrb[12].mxu1  ;;  %844 = vmatprep.mubr.f32.mxu0 %v1884_v15 }
 0x1ed   :  { %v587_v41 = vpop.f32.mrb[13].mxu1  ;;  %v593_v10 = vadd.f32 %v1454_v40, %v2254_v16 }
 0x1ee   :  { %v1654_v57 = vpop.eup %1653  ;;  %v588_v4 = vadd.f32 %v2254_v16, %v587_v41 }
 0x1ef   :  { %845 = vmatmul.mubr.f32.gmra.mrb[38].mxu0 %v1648_v42  ;;  %v1656_v28 = vpop.eup %1655 }
 0x1f0   :  { %v2267_v44 = vpop.f32.mrb[14].mxu1  ;;  %850 = vmatprep.mubr.f32.mxu0 %v1884_v15 }
 0x1f1   :  { %v2270_v45 = vpop.f32.mrb[15].mxu1  ;;  %v603_v29 = vadd.f32 %v2267_v44, %v2254_v16 }
 0x1f2   :  { %v1658_v3 = vpop.eup %1657  ;;  %v598_v20 = vadd.f32 %v2254_v16, %v2270_v45 }
 0x1f3   :  { %851 = vmatmul.mubr.f32.gmra.mrb[40].mxu0 %v1650_v46 }
 0x1f4   :  { %v1460_v48 = vpop.f32.mrb[16].mxu1  ;;  %856 = vmatprep.mubr.f32.mxu0 %v1884_v15 }
 0x1f5   :  { %v2275_v49 = vadd.f32 %v1460_v48, %v2254_v16  ;;  %v607_v50 = vpop.f32.mrb[17].mxu1 }
 0x1f6   :  { %v2278_v52 = vadd.f32 %v2254_v16, %v607_v50 }
 0x1f7   :  { %857 = vmatmul.mubr.f32.gmra.mrb[42].mxu0 %v1652_v51  ;;  %v752_v51 = vlaneseq }
 0x1f8   :  { %v1463_v54 = vpop.f32.mrb[18].mxu1  ;;  %862 = vmatprep.mubr.f32.mxu0 %v1884_v15 }
 0x1f9   :  { %v623_v55 = vadd.f32 %v1463_v54, %v2254_v16  ;;  %v617_v56 = vpop.f32.mrb[19].mxu1  ;;  %v750_v54 = vld [vmem:[%s2422_s6] sm:$0x3]  ;;  %s1885_s6 = smov [#allocation5]  }
 0x1fa   :  { %v2284_v58 = vadd.f32 %v2254_v16, %v617_v56  ;;  %s1216_s25 = sshll.u32 %s1885_s6, 4  ;;  %s1217_s25 = int_to_ptr.vmem [resolvable:$true] %s1216_s25 }
 0x1fb   :  { %1659 = vtanh.f32 %v623_v55  ;;  %863 = vmatmul.mubr.f32.gmra.mrb[44].mxu0 %v1654_v57  ;;  %s1855_s2 = scalar_lea.vmem %s1217_s25, 8192  ;;  %p1860_p9 = scmp.lt.s32.totalorder %s1217_s25, %s1217_s25 }
 0x1fc   :  { %1661 = vtanh.f32 %v573_v53  ;;  %v1466_v60 = vpop.f32.mrb[20].mxu1  ;;  %868 = vmatprep.mubr.f32.mxu0 %v1884_v15  ;;  %p1856_p8 = scmp.ne.s32.totalorder %s1217_s25, %s1855_s2  ;;  %p1861_p10 = scmp.lt.s32.totalorder %s1855_s2, %s1855_s2 }
 0x1fd   :  { %v627_v61 = vpop.f32.mrb[21].mxu1  ;;  %1663 = vtanh.f32 %v578_v59  ;;  %v633_v0 = vadd.f32 %v1466_v60, %v2254_v16 }
 0x1fe   :  { %v628_v62 = vadd.f32 %v2254_v16, %v627_v61  ;;  %p1862_p11 = por %p1861_p10, %p1860_p9 }
 0x1ff   :  { %869 = vmatmul.mubr.f32.gmra.mrb[46].mxu0 %v1656_v28 }
 0x200   :  { %1665 = vtanh.f32 %v628_v62  ;;  %v1469_v1 = vpop.f32.mrb[22].mxu1  ;;  %874 = vmatprep.mubr.f32.mxu0 %v1884_v15  ;;  %p1863_p12 = pnand %p1862_p11, %p1856_p8 }
 0x201   :  { %v637_v2 = vpop.f32.mrb[23].mxu1  ;;  %1667 = vtanh.f32 %v583_v63  ;;  %v643_v11 = vadd.f32 %v1469_v1, %v2254_v16 }
 0x202   :  { %1669 = vtanh.f32 %v633_v0  ;;  %v638_v5 = vadd.f32 %v2254_v16, %v637_v2 }
 0x203   :  { %875 = vmatmul.mubr.f32.gmra.mrb[48].mxu0 %v1658_v3  ;;  %1671 = vtanh.f32 %v588_v4 }
 0x204   :  { %880 = vmatprep.mubr.f32.mxu0 %v1884_v15  ;;  %v1472_v6 = vpop.f32.mrb[24].mxu1  ;;  %1673 = vtanh.f32 %v638_v5 }
 0x205   :  { %v1660_v7 = vpop.eup %1659  ;;  %v647_v8 = vpop.f32.mrb[25].mxu1  ;;  %1675 = vtanh.f32 %v593_v10  ;;  %v653_v30 = vadd.f32 %v1472_v6, %v2254_v16 }
 0x206   :  { %v1662_v9 = vpop.eup %1661  ;;  %941 = vmatmul.mubr.f32.vlgmr.msra.gmra.mrb[32].mxu1 %v1660_v7  ;;  %1677 = vtanh.f32 %v643_v11  ;;  %v648_v21 = vadd.f32 %v2254_v16, %v647_v8 }
 0x207   :  { %881 = vmatmul.mubr.f32.gmra.mrb[50].mxu0 %v1662_v9  ;;  %946 = vmatprep.mubr.f32.mxu1 %v1884_v15  ;;  %v1664_v13 = vpop.eup %1663  ;;  %1679 = vtanh.f32 %v598_v20 }
 0x208   :  { %886 = vmatprep.mubr.f32.mxu0 %v1884_v15  ;;  %v1475_v12 = vpop.f32.mrb[26].mxu1  ;;  %1681 = vtanh.f32 %v648_v21 }
 0x209   :  { %v663_v14 = vadd.f32 %v1475_v12, %v2254_v16  ;;  %v657_v17 = vpop.f32.mrb[27].mxu1  ;;  %1683 = vtanh.f32 %v603_v29 }
 0x20a   :  { %v1666_v18 = vpop.eup %1665  ;;  %v658_v19 = vadd.f32 %v2254_v16, %v657_v17  ;;  %1685 = vtanh.f32 %v653_v30 }
 0x20b   :  { %887 = vmatmul.mubr.f32.gmra.mrb[52].mxu0 %v1664_v13  ;;  %947 = vmatmul.mubr.f32.gmra.mrb[34].mxu1 %v1666_v18  ;;  %v1668_v23 = vpop.eup %1667  ;;  %1687 = vtanh.f32 %v2278_v52  ;;  %v753_v52 = vshrl.u32 %v752_v51, 7 }
 0x20c   :  { %892 = vmatprep.mubr.f32.mxu0 %v1884_v15  ;;  %952 = vmatprep.mubr.f32.mxu1 %v1884_v15  ;;  %v1478_v22 = vpop.f32.mrb[28].mxu1  ;;  %v1670_v26 = vpop.eup %1669  ;;  %1689 = vtanh.f32 %v658_v19 }
 0x20d   :  { %v673_v24 = vadd.f32 %v1478_v22, %v2254_v16  ;;  %v667_v25 = vpop.f32.mrb[29].mxu1  ;;  %v1672_v32 = vpop.eup %1671  ;;  %1691 = vtanh.f32 %v2275_v49  ;;  %v754_v53 = vsub.s32 0, %v753_v52  ;;  %v758_v55 = vsub.s32 1, %v753_v52 }
 0x20e   :  { %v668_v27 = vadd.f32 %v2254_v16, %v667_v25  ;;  %v1674_v35 = vpop.eup %1673  ;;  %1693 = vtanh.f32 %v663_v14 }
 0x20f   :  { %893 = vmatmul.mubr.f32.gmra.mrb[54].mxu0 %v1668_v23  ;;  %953 = vmatmul.mubr.f32.gmra.mrb[36].mxu1 %v1670_v26  ;;  %v1676_v37 = vpop.eup %1675  ;;  %1695 = vtanh.f32 %v2284_v58  ;;  %v2336_v56 = vrot.slane %v750_v54, %v754_v53  ;;  %v2338_v57 = vrot.slane %v750_v54, %v758_v55 }
 0x210   :  { %898 = vmatprep.mubr.f32.mxu0 %v1884_v15  ;;  %958 = vmatprep.mubr.f32.mxu1 %v1884_v15  ;;  %v1481_v31 = vpop.f32.mrb[30].mxu1  ;;  %v1678_v38 = vpop.eup %1677  ;;  %1697 = vtanh.f32 %v668_v27 }
 0x211   :  { %v683_v33 = vadd.f32 %v1481_v31, %v2254_v16  ;;  %v677_v34 = vpop.f32.mrb[31].mxu1  ;;  %1699 = vtanh.f32 %v673_v24 }
 0x212   :  { %v678_v36 = vadd.f32 %v2254_v16, %v677_v34  ;;  %v1680_v16 = vpop.eup %1679 }
 0x213   :  { %899 = vmatmul.mubr.f32.gmra.mrb[56].mxu0 %v1672_v32  ;;  %959 = vmatmul.mubr.f32.gmra.mrb[38].mxu1 %v1674_v35  ;;  %v1682_v39 = vpop.eup %1681 }
 0x214   :  { %904 = vmatprep.mubr.f32.mxu0 %v1884_v15  ;;  %964 = vmatprep.mubr.f32.mxu1 %v1884_v15  ;;  %v1684_v40 = vpop.eup %1683  ;;  %1701 = vtanh.f32 %v678_v36 }
 0x215   :  { %v1686_v41 = vpop.eup %1685  ;;  %1703 = vtanh.f32 %v683_v33 }
 0x216   :  { %v1688_v42 = vpop.eup %1687 }
 0x217   :  { %905 = vmatmul.mubr.f32.gmra.mrb[58].mxu0 %v1676_v37  ;;  %965 = vmatmul.mubr.f32.gmra.mrb[40].mxu1 %v1678_v38  ;;  %v1690_v43 = vpop.eup %1689 }
 0x218   :  { %910 = vmatprep.mubr.f32.mxu0 %v1884_v15  ;;  %970 = vmatprep.mubr.f32.mxu1 %v1884_v15  ;;  %v1692_v44 = vpop.eup %1691 }
 0x219   :  { %v1694_v45 = vpop.eup %1693 }
 0x21a   :  { %v1696_v46 = vpop.eup %1695 }
 0x21b   :  { %911 = vmatmul.mubr.f32.gmra.mrb[60].mxu0 %v1680_v16  ;;  %971 = vmatmul.mubr.f32.gmra.mrb[42].mxu1 %v1682_v39  ;;  %v1698_v47 = vpop.eup %1697 }
 0x21c   :  { %916 = vmatprep.mubr.f32.mxu0 %v1884_v15  ;;  %976 = vmatprep.mubr.f32.mxu1 %v1884_v15  ;;  %v1700_v48 = vpop.eup %1699 }
 0x21e   :  { %v1702_v49 = vpop.eup %1701 }
 0x21f   :  { %917 = vmatmul.mubr.f32.gmra.mrb[62].mxu0 %v1684_v40  ;;  %977 = vmatmul.mubr.f32.gmra.mrb[44].mxu1 %v1686_v41  ;;  %v1704_v50 = vpop.eup %1703 }
 0x220   :  { %922 = vmatprep.mubr.f32.mxu0 %v1884_v15  ;;  %982 = vmatprep.mubr.f32.mxu1 %v1884_v15 }
 0x223   :  { %923 = vmatmul.mubr.f32.gmra.mrb[64].mxu0 %v1688_v42  ;;  %983 = vmatmul.mubr.f32.gmra.mrb[46].mxu1 %v1690_v43 }
 0x224   :  { %928 = vmatprep.mubr.f32.mxu0 %v1884_v15  ;;  %988 = vmatprep.mubr.f32.mxu1 %v1884_v15 }
 0x227   :  { %929 = vmatmul.mubr.f32.gmra.mrb[66].mxu0 %v1692_v44  ;;  %989 = vmatmul.mubr.f32.gmra.mrb[48].mxu1 %v1694_v45 }
 0x228   :  { %934 = vmatprep.mubr.f32.mxu0 %v1884_v15  ;;  %994 = vmatprep.mubr.f32.mxu1 %v1884_v15 }
 0x22b   :  { %935 = vmatmul.mubr.f32.gmra.mrb[68].mxu0 %v1696_v46  ;;  %995 = vmatmul.mubr.f32.gmra.mrb[50].mxu1 %v1698_v47 }
 0x22c   :  { %1000 = vmatprep.mubr.f32.mxu1 %v1884_v15 }
 0x22f   :  { %1001 = vmatmul.mubr.f32.gmra.mrb[52].mxu1 %v1700_v48 }
 0x230   :  { %1006 = vmatprep.mubr.f32.mxu1 %v1884_v15 }
 0x233   :  { %1007 = vmatmul.mubr.f32.gmra.mrb[54].mxu1 %v1702_v49 }
 0x234   :  { %1012 = vmatprep.mubr.f32.mxu1 %v1884_v15 }
 0x237   :  { %1013 = vmatmul.mubr.f32.gmra.mrb[56].mxu1 %v1704_v50 }
 0x2b6   :  { %v828_v58 = vpop.f32.mrb[32].mxu0 }
 0x2b7   :  { %v829_v59 = vadd.f32 %v828_v58, %v2336_v56  ;;  %v830_v60 = vpop.f32.mrb[33].mxu0 }
 0x2b8   :  { %v831_v15 = vadd.f32 %v830_v60, %v2338_v57 }
 0x2b9   :  { %v1019_v61 = vmul.f32 1.442695, %v829_v59 }
 0x2ba   :  { %v1021_v28 = vmul.f32 1.442695, %v831_v15  ;;  %v834_v62 = vpop.f32.mrb[34].mxu0 }
 0x2bb   :  { %1705 = vpow2.f32 %v1019_v61  ;;  %v835_v63 = vadd.f32 %v834_v62, %v2336_v56  ;;  %v836_v0 = vpop.f32.mrb[35].mxu0 }
 0x2bc   :  { %1707 = vpow2.f32 %v1021_v28  ;;  %v837_v1 = vadd.f32 %v836_v0, %v2338_v57 }
 0x2bd   :  { %v1023_v2 = vmul.f32 1.442695, %v835_v63 }
 0x2be   :  { %v1025_v3 = vmul.f32 1.442695, %v837_v1  ;;  %v840_v4 = vpop.f32.mrb[36].mxu0 }
 0x2bf   :  { %1709 = vpow2.f32 %v1023_v2  ;;  %v841_v5 = vadd.f32 %v840_v4, %v2336_v56  ;;  %v842_v6 = vpop.f32.mrb[37].mxu0 }
 0x2c0   :  { %1711 = vpow2.f32 %v1025_v3  ;;  %v843_v7 = vadd.f32 %v842_v6, %v2338_v57 }
 0x2c1   :  { %v1027_v8 = vmul.f32 1.442695, %v841_v5 }
 0x2c2   :  { %v1029_v9 = vmul.f32 1.442695, %v843_v7  ;;  %v846_v10 = vpop.f32.mrb[38].mxu0 }
 0x2c3   :  { %1713 = vpow2.f32 %v1027_v8  ;;  %v847_v11 = vadd.f32 %v846_v10, %v2336_v56  ;;  %v848_v12 = vpop.f32.mrb[39].mxu0 }
 0x2c4   :  { %1715 = vpow2.f32 %v1029_v9  ;;  %v849_v13 = vadd.f32 %v848_v12, %v2338_v57 }
 0x2c5   :  { %v1706_v14 = vpop.eup %1705  ;;  %v1031_v17 = vmul.f32 1.442695, %v847_v11 }
 0x2c6   :  { %v1708_v18 = vpop.eup %1707  ;;  %1147 = vst [vmem:[#allocation5] sm:$0xff] %v1706_v14  ;;  %v1033_v19 = vmul.f32 1.442695, %v849_v13  ;;  %v852_v20 = vpop.f32.mrb[40].mxu0 }
 0x2c7   :  { %1148 = vst [vmem:[#allocation5 + $0x8] sm:$0xff] %v1708_v18  ;;  %1717 = vpow2.f32 %v1031_v17  ;;  %v853_v21 = vadd.f32 %v852_v20, %v2336_v56  ;;  %v854_v22 = vpop.f32.mrb[41].mxu0 }
 0x2c8   :  { %1719 = vpow2.f32 %v1033_v19  ;;  %v855_v23 = vadd.f32 %v854_v22, %v2338_v57 }
 0x2c9   :  { %v1710_v24 = vpop.eup %1709  ;;  %v1035_v25 = vmul.f32 1.442695, %v853_v21 }
 0x2ca   :  { %v1712_v26 = vpop.eup %1711  ;;  %1149 = vst [vmem:[#allocation5 + $0x10] sm:$0xff] %v1710_v24  ;;  %v1037_v27 = vmul.f32 1.442695, %v855_v23  ;;  %v858_v29 = vpop.f32.mrb[42].mxu0 }
 0x2cb   :  { %1150 = vst [vmem:[#allocation5 + $0x18] sm:$0xff] %v1712_v26  ;;  %1721 = vpow2.f32 %v1035_v25  ;;  %v859_v30 = vadd.f32 %v858_v29, %v2336_v56  ;;  %v860_v31 = vpop.f32.mrb[43].mxu0 }
 0x2cc   :  { %1723 = vpow2.f32 %v1037_v27  ;;  %v861_v32 = vadd.f32 %v860_v31, %v2338_v57 }
 0x2cd   :  { %v1714_v33 = vpop.eup %1713  ;;  %v1039_v34 = vmul.f32 1.442695, %v859_v30 }
 0x2ce   :  { %v1716_v35 = vpop.eup %1715  ;;  %1151 = vst [vmem:[#allocation5 + $0x20] sm:$0xff] %v1714_v33  ;;  %v1041_v36 = vmul.f32 1.442695, %v861_v32  ;;  %v864_v37 = vpop.f32.mrb[44].mxu0 }
 0x2cf   :  { %1152 = vst [vmem:[#allocation5 + $0x28] sm:$0xff] %v1716_v35  ;;  %1725 = vpow2.f32 %v1039_v34  ;;  %v865_v38 = vadd.f32 %v864_v37, %v2336_v56  ;;  %v866_v16 = vpop.f32.mrb[45].mxu0 }
 0x2d0   :  { %1727 = vpow2.f32 %v1041_v36  ;;  %v867_v39 = vadd.f32 %v866_v16, %v2338_v57 }
 0x2d1   :  { %v1718_v40 = vpop.eup %1717  ;;  %v1043_v41 = vmul.f32 1.442695, %v865_v38 }
 0x2d2   :  { %v1720_v42 = vpop.eup %1719  ;;  %1153 = vst [vmem:[#allocation5 + $0x30] sm:$0xff] %v1718_v40  ;;  %v1045_v43 = vmul.f32 1.442695, %v867_v39  ;;  %v870_v44 = vpop.f32.mrb[46].mxu0 }
 0x2d3   :  { %1154 = vst [vmem:[#allocation5 + $0x38] sm:$0xff] %v1720_v42  ;;  %1729 = vpow2.f32 %v1043_v41  ;;  %v871_v45 = vadd.f32 %v870_v44, %v2336_v56  ;;  %v872_v46 = vpop.f32.mrb[47].mxu0 }
 0x2d4   :  { %1731 = vpow2.f32 %v1045_v43  ;;  %v873_v47 = vadd.f32 %v872_v46, %v2338_v57 }
 0x2d5   :  { %v1722_v48 = vpop.eup %1721  ;;  %v1047_v49 = vmul.f32 1.442695, %v871_v45 }
 0x2d6   :  { %v1724_v50 = vpop.eup %1723  ;;  %1155 = vst [vmem:[#allocation5 + $0x40] sm:$0xff] %v1722_v48  ;;  %v1049_v51 = vmul.f32 1.442695, %v873_v47  ;;  %v876_v52 = vpop.f32.mrb[48].mxu0 }
 0x2d7   :  { %1156 = vst [vmem:[#allocation5 + $0x48] sm:$0xff] %v1724_v50  ;;  %1733 = vpow2.f32 %v1047_v49  ;;  %v877_v53 = vadd.f32 %v876_v52, %v2336_v56  ;;  %v878_v54 = vpop.f32.mrb[49].mxu0 }
 0x2d8   :  { %1735 = vpow2.f32 %v1049_v51  ;;  %v879_v55 = vadd.f32 %v878_v54, %v2338_v57 }
 0x2d9   :  { %v1726_v58 = vpop.eup %1725  ;;  %v1051_v59 = vmul.f32 1.442695, %v877_v53  ;;  %v942_v60 = vpop.f32.mrb[32].mxu1 }
 0x2da   :  { %v1728_v15 = vpop.eup %1727  ;;  %1157 = vst [vmem:[#allocation5 + $0x50] sm:$0xff] %v1726_v58  ;;  %v1053_v61 = vmul.f32 1.442695, %v879_v55  ;;  %v943_v28 = vadd.f32 %v942_v60, %v2336_v56  ;;  %v882_v62 = vpop.f32.mrb[50].mxu0 }
 0x2db   :  { %v944_v63 = vpop.f32.mrb[33].mxu1  ;;  %1158 = vst [vmem:[#allocation5 + $0x58] sm:$0xff] %v1728_v15  ;;  %1737 = vpow2.f32 %v1051_v59  ;;  %v883_v0 = vadd.f32 %v882_v62, %v2336_v56  ;;  %v884_v2 = vpop.f32.mrb[51].mxu0 }
 0x2dc   :  { %v945_v1 = vadd.f32 %v944_v63, %v2338_v57  ;;  %1739 = vpow2.f32 %v1053_v61  ;;  %v1095_v3 = vmul.f32 1.442695, %v943_v28  ;;  %v885_v4 = vadd.f32 %v884_v2, %v2338_v57 }
 0x2dd   :  { %v1730_v5 = vpop.eup %1729  ;;  %v1055_v6 = vmul.f32 1.442695, %v883_v0 }
 0x2de   :  { %v1097_v7 = vmul.f32 1.442695, %v945_v1  ;;  %v1732_v8 = vpop.eup %1731  ;;  %1159 = vst [vmem:[#allocation5 + $0x60] sm:$0xff] %v1730_v5  ;;  %1741 = vpow2.f32 %v1095_v3  ;;  %v1057_v9 = vmul.f32 1.442695, %v885_v4  ;;  %v888_v10 = vpop.f32.mrb[52].mxu0 }
 0x2df   :  { %v948_v11 = vpop.f32.mrb[34].mxu1  ;;  %1160 = vst [vmem:[#allocation5 + $0x68] sm:$0xff] %v1732_v8  ;;  %1743 = vpow2.f32 %v1055_v6  ;;  %v889_v12 = vadd.f32 %v888_v10, %v2336_v56  ;;  %v890_v14 = vpop.f32.mrb[53].mxu0 }
 0x2e0   :  { %v949_v13 = vadd.f32 %v948_v11, %v2336_v56  ;;  %v950_v17 = vpop.f32.mrb[35].mxu1  ;;  %1745 = vpow2.f32 %v1097_v7  ;;  %v891_v18 = vadd.f32 %v890_v14, %v2338_v57 }
 0x2e1   :  { %v951_v19 = vadd.f32 %v950_v17, %v2338_v57  ;;  %v1734_v20 = vpop.eup %1733  ;;  %1747 = vpow2.f32 %v1057_v9  ;;  %v1059_v21 = vmul.f32 1.442695, %v889_v12 }
 0x2e2   :  { %v1099_v22 = vmul.f32 1.442695, %v949_v13  ;;  %v1736_v23 = vpop.eup %1735  ;;  %1161 = vst [vmem:[#allocation5 + $0x70] sm:$0xff] %v1734_v20  ;;  %v1061_v24 = vmul.f32 1.442695, %v891_v18  ;;  %v894_v26 = vpop.f32.mrb[54].mxu0 }
 0x2e3   :  { %v1101_v25 = vmul.f32 1.442695, %v951_v19  ;;  %v954_v27 = vpop.f32.mrb[36].mxu1  ;;  %1162 = vst [vmem:[#allocation5 + $0x78] sm:$0xff] %v1736_v23  ;;  %1749 = vpow2.f32 %v1059_v21  ;;  %v895_v29 = vadd.f32 %v894_v26, %v2336_v56  ;;  %v896_v31 = vpop.f32.mrb[55].mxu0 }
 0x2e4   :  { %v955_v30 = vadd.f32 %v954_v27, %v2336_v56  ;;  %v956_v32 = vpop.f32.mrb[37].mxu1  ;;  %1751 = vpow2.f32 %v1099_v22  ;;  %v897_v33 = vadd.f32 %v896_v31, %v2338_v57 }
 0x2e5   :  { %v957_v34 = vadd.f32 %v956_v32, %v2338_v57  ;;  %v1738_v35 = vpop.eup %1737  ;;  %1753 = vpow2.f32 %v1061_v24  ;;  %v1063_v36 = vmul.f32 1.442695, %v895_v29 }
 0x2e6   :  { %v1103_v37 = vmul.f32 1.442695, %v955_v30  ;;  %v1740_v38 = vpop.eup %1739  ;;  %1163 = vst [vmem:[#allocation5 + $0x80] sm:$0xff] %v1738_v35  ;;  %1755 = vpow2.f32 %v1101_v25  ;;  %v1065_v16 = vmul.f32 1.442695, %v897_v33  ;;  %v900_v40 = vpop.f32.mrb[56].mxu0 }
 0x2e7   :  { %v1105_v39 = vmul.f32 1.442695, %v957_v34  ;;  %v960_v41 = vpop.f32.mrb[38].mxu1  ;;  %1164 = vst [vmem:[#allocation5 + $0x88] sm:$0xff] %v1740_v38  ;;  %1757 = vpow2.f32 %v1063_v36  ;;  %v901_v42 = vadd.f32 %v900_v40, %v2336_v56  ;;  %v902_v44 = vpop.f32.mrb[57].mxu0 }
 0x2e8   :  { %v961_v43 = vadd.f32 %v960_v41, %v2336_v56  ;;  %v962_v45 = vpop.f32.mrb[39].mxu1  ;;  %v1742_v46 = vpop.eup %1741  ;;  %1759 = vpow2.f32 %v1103_v37  ;;  %v903_v47 = vadd.f32 %v902_v44, %v2338_v57 }
 0x2e9   :  { %v963_v48 = vadd.f32 %v962_v45, %v2338_v57  ;;  %v1744_v49 = vpop.eup %1743  ;;  %1185 = vst [vmem:[#allocation5 + $0x130] sm:$0xff] %v1742_v46  ;;  %1761 = vpow2.f32 %v1065_v16  ;;  %v1067_v50 = vmul.f32 1.442695, %v901_v42 }
 0x2ea   :  { %v1107_v51 = vmul.f32 1.442695, %v961_v43  ;;  %v1746_v52 = vpop.eup %1745  ;;  %1165 = vst [vmem:[#allocation5 + $0x90] sm:$0xff] %v1744_v49  ;;  %1763 = vpow2.f32 %v1105_v39  ;;  %v1069_v53 = vmul.f32 1.442695, %v903_v47  ;;  %v906_v55 = vpop.f32.mrb[58].mxu0 }
 0x2eb   :  { %v1109_v54 = vmul.f32 1.442695, %v963_v48  ;;  %v966_v58 = vpop.f32.mrb[40].mxu1  ;;  %v1748_v59 = vpop.eup %1747  ;;  %1186 = vst [vmem:[#allocation5 + $0x138] sm:$0xff] %v1746_v52  ;;  %1765 = vpow2.f32 %v1067_v50  ;;  %v907_v60 = vadd.f32 %v906_v55, %v2336_v56 }
 0x2ec   :  { %v967_v15 = vadd.f32 %v966_v58, %v2336_v56  ;;  %v908_v61 = vpop.f32.mrb[59].mxu0  ;;  %v968_v28 = vpop.f32.mrb[41].mxu1  ;;  %1166 = vst [vmem:[#allocation5 + $0x98] sm:$0xff] %v1748_v59  ;;  %1767 = vpow2.f32 %v1107_v51 }
 0x2ed   :  { %v909_v62 = vadd.f32 %v908_v61, %v2338_v57  ;;  %v969_v63 = vadd.f32 %v968_v28, %v2338_v57  ;;  %v1750_v0 = vpop.eup %1749  ;;  %1769 = vpow2.f32 %v1069_v53  ;;  %v1071_v1 = vmul.f32 1.442695, %v907_v60 }
 0x2ee   :  { %v1111_v2 = vmul.f32 1.442695, %v967_v15  ;;  %v1752_v3 = vpop.eup %1751  ;;  %1167 = vst [vmem:[#allocation5 + $0xa0] sm:$0xff] %v1750_v0  ;;  %1771 = vpow2.f32 %v1109_v54  ;;  %v912_v6 = vpop.f32.mrb[60].mxu0 }
 0x2ef   :  { %v1073_v4 = vmul.f32 1.442695, %v909_v62  ;;  %v1113_v5 = vmul.f32 1.442695, %v969_v63  ;;  %v972_v7 = vpop.f32.mrb[42].mxu1  ;;  %v1754_v8 = vpop.eup %1753  ;;  %1187 = vst [vmem:[#allocation5 + $0x140] sm:$0xff] %v1752_v3  ;;  %1773 = vpow2.f32 %v1071_v1  ;;  %v913_v9 = vadd.f32 %v912_v6, %v2336_v56 }
 0x2f0   :  { %v973_v10 = vadd.f32 %v972_v7, %v2336_v56  ;;  %v914_v11 = vpop.f32.mrb[61].mxu0  ;;  %v974_v12 = vpop.f32.mrb[43].mxu1  ;;  %1168 = vst [vmem:[#allocation5 + $0xa8] sm:$0xff] %v1754_v8  ;;  %1775 = vpow2.f32 %v1111_v2 }
 0x2f1   :  { %v1756_v13 = vpop.eup %1755  ;;  %v915_v14 = vadd.f32 %v914_v11, %v2338_v57  ;;  %v975_v17 = vadd.f32 %v974_v12, %v2338_v57  ;;  %1777 = vpow2.f32 %v1073_v4  ;;  %v1075_v19 = vmul.f32 1.442695, %v913_v9 }
 0x2f2   :  { %v1758_v18 = vpop.eup %1757  ;;  %1188 = vst [vmem:[#allocation5 + $0x148] sm:$0xff] %v1756_v13  ;;  %v1115_v20 = vmul.f32 1.442695, %v973_v10  ;;  %1779 = vpow2.f32 %v1113_v5  ;;  %v918_v24 = vpop.f32.mrb[62].mxu0 }
 0x2f3   :  { %v1760_v21 = vpop.eup %1759  ;;  %1169 = vst [vmem:[#allocation5 + $0xb0] sm:$0xff] %v1758_v18  ;;  %v1077_v22 = vmul.f32 1.442695, %v915_v14  ;;  %v1117_v23 = vmul.f32 1.442695, %v975_v17  ;;  %v978_v25 = vpop.f32.mrb[44].mxu1  ;;  %1781 = vpow2.f32 %v1075_v19  ;;  %v919_v27 = vadd.f32 %v918_v24, %v2336_v56 }
 0x2f4   :  { %v1762_v26 = vpop.eup %1761  ;;  %1189 = vst [vmem:[#allocation5 + $0x150] sm:$0xff] %v1760_v21  ;;  %v979_v29 = vadd.f32 %v978_v25, %v2336_v56  ;;  %v920_v30 = vpop.f32.mrb[63].mxu0  ;;  %1783 = vpow2.f32 %v1115_v20 }
 0x2f5   :  { %v980_v31 = vpop.f32.mrb[45].mxu1  ;;  %v1764_v32 = vpop.eup %1763  ;;  %1170 = vst [vmem:[#allocation5 + $0xb8] sm:$0xff] %v1762_v26  ;;  %v921_v33 = vadd.f32 %v920_v30, %v2338_v57  ;;  %1785 = vpow2.f32 %v1077_v22  ;;  %v1079_v36 = vmul.f32 1.442695, %v919_v27 }
 0x2f6   :  { %v981_v34 = vadd.f32 %v980_v31, %v2338_v57  ;;  %v1766_v35 = vpop.eup %1765  ;;  %1190 = vst [vmem:[#allocation5 + $0x158] sm:$0xff] %v1764_v32  ;;  %v1119_v37 = vmul.f32 1.442695, %v979_v29  ;;  %1787 = vpow2.f32 %v1117_v23  ;;  %v924_v40 = vpop.f32.mrb[64].mxu0 }
 0x2f7   :  { %v1768_v38 = vpop.eup %1767  ;;  %1171 = vst [vmem:[#allocation5 + $0xc0] sm:$0xff] %v1766_v35  ;;  %v1081_v16 = vmul.f32 1.442695, %v921_v33  ;;  %v984_v41 = vpop.f32.mrb[46].mxu1  ;;  %1789 = vpow2.f32 %v1079_v36  ;;  %v925_v43 = vadd.f32 %v924_v40, %v2336_v56 }
 0x2f8   :  { %v1121_v39 = vmul.f32 1.442695, %v981_v34  ;;  %v1770_v42 = vpop.eup %1769  ;;  %1191 = vst [vmem:[#allocation5 + $0x160] sm:$0xff] %v1768_v38  ;;  %v985_v44 = vadd.f32 %v984_v41, %v2336_v56  ;;  %v926_v45 = vpop.f32.mrb[65].mxu0  ;;  %1791 = vpow2.f32 %v1119_v37 }
 0x2f9   :  { %v986_v46 = vpop.f32.mrb[47].mxu1  ;;  %v1772_v47 = vpop.eup %1771  ;;  %1172 = vst [vmem:[#allocation5 + $0xc8] sm:$0xff] %v1770_v42  ;;  %v927_v48 = vadd.f32 %v926_v45, %v2338_v57  ;;  %1793 = vpow2.f32 %v1081_v16  ;;  %v1083_v51 = vmul.f32 1.442695, %v925_v43 }
 0x2fa   :  { %v987_v49 = vadd.f32 %v986_v46, %v2338_v57  ;;  %v1774_v50 = vpop.eup %1773  ;;  %1192 = vst [vmem:[#allocation5 + $0x168] sm:$0xff] %v1772_v47  ;;  %v1123_v52 = vmul.f32 1.442695, %v985_v44  ;;  %1795 = vpow2.f32 %v1121_v39  ;;  %v930_v58 = vpop.f32.mrb[66].mxu0 }
 0x2fb   :  { %v1776_v53 = vpop.eup %1775  ;;  %1173 = vst [vmem:[#allocation5 + $0xd0] sm:$0xff] %v1774_v50  ;;  %v1085_v54 = vmul.f32 1.442695, %v927_v48  ;;  %v990_v59 = vpop.f32.mrb[48].mxu1  ;;  %1797 = vpow2.f32 %v1083_v51  ;;  %v931_v15 = vadd.f32 %v930_v58, %v2336_v56 }
 0x2fc   :  { %v1125_v55 = vmul.f32 1.442695, %v987_v49  ;;  %v1778_v60 = vpop.eup %1777  ;;  %1193 = vst [vmem:[#allocation5 + $0x170] sm:$0xff] %v1776_v53  ;;  %v991_v61 = vadd.f32 %v990_v59, %v2336_v56  ;;  %v932_v28 = vpop.f32.mrb[67].mxu0  ;;  %1799 = vpow2.f32 %v1123_v52 }
 0x2fd   :  { %v992_v62 = vpop.f32.mrb[49].mxu1  ;;  %v1780_v63 = vpop.eup %1779  ;;  %1174 = vst [vmem:[#allocation5 + $0xd8] sm:$0xff] %v1778_v60  ;;  %v933_v0 = vadd.f32 %v932_v28, %v2338_v57  ;;  %1801 = vpow2.f32 %v1085_v54  ;;  %v1087_v3 = vmul.f32 1.442695, %v931_v15 }
 0x2fe   :  { %v993_v1 = vadd.f32 %v992_v62, %v2338_v57  ;;  %v1782_v2 = vpop.eup %1781  ;;  %1194 = vst [vmem:[#allocation5 + $0x178] sm:$0xff] %v1780_v63  ;;  %v1127_v4 = vmul.f32 1.442695, %v991_v61  ;;  %1803 = vpow2.f32 %v1125_v55  ;;  %v936_v8 = vpop.f32.mrb[68].mxu0 }
 0x2ff   :  { %v1784_v5 = vpop.eup %1783  ;;  %1175 = vst [vmem:[#allocation5 + $0xe0] sm:$0xff] %v1782_v2  ;;  %v1089_v6 = vmul.f32 1.442695, %v933_v0  ;;  %v996_v9 = vpop.f32.mrb[50].mxu1  ;;  %1805 = vpow2.f32 %v1087_v3  ;;  %v937_v11 = vadd.f32 %v936_v8, %v2336_v56 }
 0x300   :  { %v1129_v7 = vmul.f32 1.442695, %v993_v1  ;;  %v1786_v10 = vpop.eup %1785  ;;  %1195 = vst [vmem:[#allocation5 + $0x180] sm:$0xff] %v1784_v5  ;;  %v997_v12 = vadd.f32 %v996_v9, %v2336_v56  ;;  %v938_v13 = vpop.f32.mrb[69].mxu0  ;;  %1807 = vpow2.f32 %v1127_v4 }
 0x301   :  { %v998_v14 = vpop.f32.mrb[51].mxu1  ;;  %v1788_v17 = vpop.eup %1787  ;;  %1176 = vst [vmem:[#allocation5 + $0xe8] sm:$0xff] %v1786_v10  ;;  %v939_v18 = vadd.f32 %v938_v13, %v2338_v57  ;;  %1809 = vpow2.f32 %v1089_v6  ;;  %v1091_v21 = vmul.f32 1.442695, %v937_v11 }
 0x302   :  { %v999_v19 = vadd.f32 %v998_v14, %v2338_v57  ;;  %v1790_v20 = vpop.eup %1789  ;;  %1196 = vst [vmem:[#allocation5 + $0x188] sm:$0xff] %v1788_v17  ;;  %v1131_v22 = vmul.f32 1.442695, %v997_v12  ;;  %1811 = vpow2.f32 %v1129_v7  ;;  %v1002_v26 = vpop.f32.mrb[52].mxu1 }
 0x303   :  { %v1792_v23 = vpop.eup %1791  ;;  %1177 = vst [vmem:[#allocation5 + $0xf0] sm:$0xff] %v1790_v20  ;;  %v1093_v24 = vmul.f32 1.442695, %v939_v18  ;;  %1813 = vpow2.f32 %v1091_v21  ;;  %v1003_v29 = vadd.f32 %v1002_v26, %v2336_v56  ;;  %v1004_v30 = vpop.f32.mrb[53].mxu1 }
 0x304   :  { %v1133_v25 = vmul.f32 1.442695, %v999_v19  ;;  %v1794_v27 = vpop.eup %1793  ;;  %1197 = vst [vmem:[#allocation5 + $0x190] sm:$0xff] %v1792_v23  ;;  %1815 = vpow2.f32 %v1131_v22  ;;  %v1005_v32 = vadd.f32 %v1004_v30, %v2338_v57 }
 0x305   :  { %v1796_v31 = vpop.eup %1795  ;;  %1178 = vst [vmem:[#allocation5 + $0xf8] sm:$0xff] %v1794_v27  ;;  %1817 = vpow2.f32 %v1093_v24  ;;  %v1135_v34 = vmul.f32 1.442695, %v1003_v29 }
 0x306   :  { %v1798_v33 = vpop.eup %1797  ;;  %1198 = vst [vmem:[#allocation5 + $0x198] sm:$0xff] %v1796_v31  ;;  %1819 = vpow2.f32 %v1133_v25  ;;  %v1137_v36 = vmul.f32 1.442695, %v1005_v32  ;;  %v1008_v37 = vpop.f32.mrb[54].mxu1 }
 0x307   :  { %v1800_v35 = vpop.eup %1799  ;;  %1179 = vst [vmem:[#allocation5 + $0x100] sm:$0xff] %v1798_v33  ;;  %1821 = vpow2.f32 %v1135_v34  ;;  %v1009_v16 = vadd.f32 %v1008_v37, %v2336_v56  ;;  %v1010_v39 = vpop.f32.mrb[55].mxu1 }
 0x308   :  { %v1802_v38 = vpop.eup %1801  ;;  %1199 = vst [vmem:[#allocation5 + $0x1a0] sm:$0xff] %v1800_v35  ;;  %1823 = vpow2.f32 %v1137_v36  ;;  %v1011_v41 = vadd.f32 %v1010_v39, %v2338_v57 }
 0x309   :  { %v1804_v40 = vpop.eup %1803  ;;  %1180 = vst [vmem:[#allocation5 + $0x108] sm:$0xff] %v1802_v38  ;;  %v1139_v43 = vmul.f32 1.442695, %v1009_v16 }
 0x30a   :  { %v1806_v42 = vpop.eup %1805  ;;  %1200 = vst [vmem:[#allocation5 + $0x1a8] sm:$0xff] %v1804_v40  ;;  %v1141_v45 = vmul.f32 1.442695, %v1011_v41  ;;  %v1014_v46 = vpop.f32.mrb[56].mxu1 }
 0x30b   :  { %v1808_v44 = vpop.eup %1807  ;;  %1181 = vst [vmem:[#allocation5 + $0x110] sm:$0xff] %v1806_v42  ;;  %1825 = vpow2.f32 %v1139_v43  ;;  %v1015_v48 = vadd.f32 %v1014_v46, %v2336_v56  ;;  %v1016_v49 = vpop.f32.mrb[57].mxu1 }
 0x30c   :  { %v1810_v47 = vpop.eup %1809  ;;  %1201 = vst [vmem:[#allocation5 + $0x1b0] sm:$0xff] %v1808_v44  ;;  %1827 = vpow2.f32 %v1141_v45  ;;  %v1017_v51 = vadd.f32 %v1016_v49, %v2338_v57 }
 0x30d   :  { %v1812_v50 = vpop.eup %1811  ;;  %1182 = vst [vmem:[#allocation5 + $0x118] sm:$0xff] %v1810_v47  ;;  %v1143_v53 = vmul.f32 1.442695, %v1015_v48 }
 0x30e   :  { %v1814_v52 = vpop.eup %1813  ;;  %1202 = vst [vmem:[#allocation5 + $0x1b8] sm:$0xff] %v1812_v50  ;;  %v1145_v55 = vmul.f32 1.442695, %v1017_v51 }
 0x30f   :  { %v1816_v54 = vpop.eup %1815  ;;  %1183 = vst [vmem:[#allocation5 + $0x120] sm:$0xff] %v1814_v52  ;;  %1829 = vpow2.f32 %v1143_v53 }
 0x310   :  { %v1818_v58 = vpop.eup %1817  ;;  %1203 = vst [vmem:[#allocation5 + $0x1c0] sm:$0xff] %v1816_v54  ;;  %1831 = vpow2.f32 %v1145_v55 }
 0x311   :  { %v1820_v59 = vpop.eup %1819  ;;  %1184 = vst [vmem:[#allocation5 + $0x128] sm:$0xff] %v1818_v58 }
 0x312   :  { %v1822_v60 = vpop.eup %1821  ;;  %1204 = vst [vmem:[#allocation5 + $0x1c8] sm:$0xff] %v1820_v59 }
 0x313   :  { %v1824_v56 = vpop.eup %1823  ;;  %1205 = vst [vmem:[#allocation5 + $0x1d0] sm:$0xff] %v1822_v60 }
 0x314   :  { %1206 = vst [vmem:[#allocation5 + $0x1d8] sm:$0xff] %v1824_v56 }
 0x315   :  { %v1826_v15 = vpop.eup %1825 }
 0x316   :  { %v1828_v61 = vpop.eup %1827  ;;  %1207 = vst [vmem:[#allocation5 + $0x1e0] sm:$0xff] %v1826_v15 }
 0x317   :  { %1208 = vst [vmem:[#allocation5 + $0x1e8] sm:$0xff] %v1828_v61 }
 0x319   :  { %v1830_v57 = vpop.eup %1829 }
 0x31a   :  { %v1832_v28 = vpop.eup %1831  ;;  %1209 = vst [vmem:[#allocation5 + $0x1f0] sm:$0xff] %v1830_v57 }
 0x31b   :  { %1210 = vst [vmem:[#allocation5 + $0x1f8] sm:$0xff] %v1832_v28 }
 0x31c   :  { %1866 = shalt.err (!%p1863_p12)
}
 0x31d   :  { %s1867_s1 = scalar_lea.hbm %s2423_s7, 8192 }
 0x31e   :  { %p1868_p13 = scmp.ne.s32.totalorder %s2423_s7, %s1867_s1  ;;  %p1871_p0 = scmp.lt.u32.totalorder %s1867_s1, %s2423_s7 }
 0x320   :  { %p1873_p1 = pnand %p1871_p0, %p1868_p13 }
 0x322   :  { %1876 = shalt.err (!%p1873_p1)
}
 0x323   :  { %s1886_s9 = smov 256   ;;  %s1887_s10 = smov 16  }
 0x324   :  { %1222 = dma.vmem_to_hbm [thread:$0]  %s1217_s25, 8192, %s2423_s7, [#allocation4], %s1886_s9, %s1886_s9, %s1887_s10  }
 0x325   :  { %1879 = dma.done.wait [#allocation4], 8192  }
 0x326   :  { %1880 = vsyncadd [#allocation4], 4294959104 }
 0x327   :  { %1226 = vsyncpa [#allocation3], 1 }
 0x328   :  { %1227 = vsyncpa [#allocation4], 1 }

</bundles_post_ra>
